<compile_context>
chip_gen: v7x
topology: tpu7x:2x2x1
jax: 0.10.0
libtpu: 0.0.40
codegen_flags: <defaults>
</compile_context>

<pallas_src>
import functools
import math

import jax
import jax.numpy as jnp
import numpy as np
from jax import lax
from jax.experimental import pallas as pl
from jax.experimental.pallas import tpu as pltpu

_NEG_INF = -1e30   # additive mask value (kept in f32; never cast to bf16)


def _collapse_cams_kernel(x_ref, wqkv_ref, bqkv_ref, wo_ref, bo_ref, bias_ref,
                          o_ref, *, kdim, vdim):
    """One grid step: G whole batch elements, rows = G*S tokens.

    Everything is feature-major (features on sublanes, tokens on lanes) so all
    loads/stores are lane-dense.  Attention over the rows window is made
    block-diagonal (per batch element) by the additive bias.
    """
    x_t = x_ref[...]                                          # (C, rows) f32

    # Fused Q|K|V projection: qkv^T = Wqkv @ x^T  (bf16 operands, f32 acc).
    qkv_t = jnp.dot(wqkv_ref[...], x_t.astype(jnp.bfloat16),
                    preferred_element_type=jnp.float32) + bqkv_ref[...]
    q_t = qkv_t[:kdim, :]                                     # (kdim, rows) f32
    k_t = qkv_t[kdim:2 * kdim, :]                             # (kdim, rows)
    v_t = qkv_t[2 * kdim:2 * kdim + vdim, :]                  # (vdim, rows)
    # (sublane slices at multiples of 8 -> layout-preserving, no relayout)

    # scores[i, j] = q_i . k_j   (1/sqrt(kdim) already folded into Wq/bq).
    # One cheap XLU transpose of the small q tile gives a canonical MXU matmul.
    q = q_t.T.astype(jnp.bfloat16)                            # (rows, kdim)
    scores = jnp.dot(q, k_t.astype(jnp.bfloat16),
                     preferred_element_type=jnp.float32)      # (rows, rows) f32
    scores = scores + bias_ref[...]                           # diag + x-batch mask

    # Numerically-stable softmax in f32; the reciprocal goes to the EUP.
    scores = scores - jnp.max(scores, axis=-1, keepdims=True)
    p = jnp.exp(scores)
    attn = p * pl.reciprocal(jnp.sum(p, axis=-1, keepdims=True), approx=True)

    # y^T[d, i] = sum_j v^T[d, j] * attn[i, j]   (contract the last dims).
    y_t = lax.dot_general(v_t.astype(jnp.bfloat16), attn.astype(jnp.bfloat16),
                          (((1,), (1,)), ((), ())),
                          preferred_element_type=jnp.float32)  # (vdim, rows)

    # Residual + output projection: out^T = x^T + Wo @ y^T + bo.
    out_t = x_t + jnp.dot(wo_ref[...], y_t.astype(jnp.bfloat16),
                          preferred_element_type=jnp.float32) + bo_ref[...]
    o_ref[...] = out_t.astype(o_ref.dtype)


def _choose_group(B, S, *, target_rows=256, max_rows=512):
    """Batch elements per grid step (rows = G*S tokens per step).

    rows is kept a multiple of 128 whenever possible (fully lane-dense,
    unmasked stores), around `target_rows`, and capped at `max_rows` because
    the (rows, rows) f32 scores/attn tiles grow quadratically (VMEM budget --
    v7x only has 64 MiB).  The caller pads the batch up to a multiple of G, so
    we never fall back to a single giant block.
    """
    quantum = 128 // math.gcd(128, S)         # smallest G with (G*S) % 128 == 0
    if quantum * S > max_rows:                # very large S: give up lane align
        return max(1, min(B, max(1, max_rows // S)))
    g = max(quantum, (target_rows // (quantum * S)) * quantum)
    g = min(g, max_rows // S)
    g = min(g, -(-B // quantum) * quantum)    # don't over-pad tiny batches
    return max(g, quantum)


def _attention_bias(rows, s):
    """Additive (rows, rows) mask: 0 where attention is allowed, -1e30 else.

    Allowed = same batch element (block-diagonal) and not the diagonal itself.
    For the degenerate s == 1 case the diagonal is left unmasked, which equals
    the original module's behavior (softmax over a single fully-masked score
    still yields weight 1 on that score).
    """
    tok = np.arange(rows)
    same = (tok[:, None] // s) == (tok[None, :] // s)
    diag = tok[:, None] == tok[None, :]
    allowed = same if s == 1 else (same & ~diag)
    return jnp.asarray(np.where(allowed, 0.0, _NEG_INF), dtype=jnp.float32)


def prepare_params(params):
    """One-time prep: fold 1/sqrt(kdim) into Wq/bq, fuse Q|K|V, cast to bf16.

    `params` uses PyTorch nn.Linear conventions: weight (out_feat, in_feat),
    bias (out_feat,).  All returned weights are feature-major for the kernel.
    """
    kdim = params["wq"].shape[0]
    vdim = params["wv"].shape[0]
    scale = jnp.float32(1.0 / math.sqrt(kdim))
    wqkv = jnp.concatenate([params["wq"] * scale, params["wk"], params["wv"]],
                           axis=0)                              # (2k+v, C)
    bqkv = jnp.concatenate([params["bq"] * scale, params["bk"], params["bv"]],
                           axis=0)                              # (2k+v,)
    return {
        "wqkv": wqkv.astype(jnp.bfloat16),                      # (2k+v, C) bf16
        "bqkv": bqkv[:, None].astype(jnp.float32),              # (2k+v, 1) f32
        "wo": params["wo"].astype(jnp.bfloat16),                # (C, vdim) bf16
        "bo": params["bo"][:, None].astype(jnp.float32),        # (C, 1)    f32
        "kdim": kdim, "vdim": vdim,
    }


def collapse_cams_block(x, fused, *, target_rows=256, max_rows=512):
    """x: (B, S, C) float32.  fused: output of prepare_params()."""
    B, S, C = x.shape
    kdim, vdim = fused["kdim"], fused["vdim"]
    n_qkv = 2 * kdim + vdim

    G = _choose_group(B, S, target_rows=target_rows, max_rows=max_rows)
    rows = G * S                       # tokens per grid step (the lane dim)
    n_steps = -(-B // G)               # ceil: pad the batch, never a giant block
    b_pad = n_steps * G

    x_p = x if b_pad == B else jnp.pad(x, ((0, b_pad - B), (0, 0), (0, 0)))
    # Feature-major, lane-dense presentation: (n_steps, C, rows).
    x_t = jnp.transpose(x_p.reshape(n_steps, rows, C), (0, 2, 1))

    bias = _attention_bias(rows, S)    # (rows, rows) f32, grid-invariant

    kernel = functools.partial(_collapse_cams_kernel, kdim=kdim, vdim=vdim)

    total_rows = n_steps * rows
    cost = pl.CostEstimate(
        flops=int(2 * total_rows * (C * n_qkv + rows * kdim + rows * vdim
                                    + vdim * C)),
        transcendentals=int(total_rows * rows),
        bytes_accessed=int(4 * 2 * total_rows * C             # x in + out (f32)
                           + 2 * (n_qkv * C + C * vdim)       # bf16 weights
                           + 4 * (n_qkv + C)                  # biases
                           + 4 * rows * rows))                # attention bias

    out_t = pl.pallas_call(
        kernel,
        out_shape=jax.ShapeDtypeStruct((n_steps, C, rows), x.dtype),
        grid_spec=pltpu.PrefetchScalarGridSpec(
            num_scalar_prefetch=0,
            grid=(n_steps,),
            in_specs=[
                pl.BlockSpec((None, C, rows), lambda i: (i, 0, 0)),  # x^T chunk
                pl.BlockSpec((n_qkv, C), lambda i: (0, 0)),          # Wqkv bf16
                pl.BlockSpec((n_qkv, 1), lambda i: (0, 0)),          # bqkv f32
                pl.BlockSpec((C, vdim), lambda i: (0, 0)),           # Wo   bf16
                pl.BlockSpec((C, 1), lambda i: (0, 0)),              # bo   f32
                pl.BlockSpec((rows, rows), lambda i: (0, 0)),        # attn bias
            ],
            out_specs=pl.BlockSpec((None, C, rows), lambda i: (i, 0, 0)),
        ),
        compiler_params=pltpu.CompilerParams(
            dimension_semantics=("parallel",),        # shard steps across TCs
            vmem_limit_bytes=32 * 1024 * 1024),       # explicit VMEM budget
        cost_estimate=cost,
    )(x_t, fused["wqkv"], fused["bqkv"], fused["wo"], fused["bo"], bias)

    out = jnp.transpose(out_t, (0, 2, 1)).reshape(b_pad, S, C)
    return out[:B]


def _reference(x, params):
    """Pure-JAX f32 reference of the same forward pass (PyTorch conventions)."""
    q = x @ params["wq"].T + params["bq"]
    k = x @ params["wk"].T + params["bk"]
    v = x @ params["wv"].T + params["bv"]
    kdim = q.shape[-1]
    scores = jnp.einsum("bqd,bkd->bqk", q, k) / math.sqrt(kdim)
    S = x.shape[1]
    scores = jnp.where(jnp.eye(S, dtype=bool)[None], _NEG_INF, scores)
    attn = jax.nn.softmax(scores, axis=-1)
    y = jnp.einsum("bqk,bkd->bqd", attn, v)
    return x + y @ params["wo"].T + params["bo"]


def _init_params(key, c, kdim, vdim):
    """Random params in PyTorch nn.Linear convention (out_feat, in_feat)."""
    ks = jax.random.split(key, 8)
    s = 0.1
    return {
        "wq": s * jax.random.normal(ks[0], (kdim, c), jnp.float32),
        "bq": s * jax.random.normal(ks[1], (kdim,), jnp.float32),
        "wk": s * jax.random.normal(ks[2], (kdim, c), jnp.float32),
        "bk": s * jax.random.normal(ks[3], (kdim,), jnp.float32),
        "wv": s * jax.random.normal(ks[4], (vdim, c), jnp.float32),
        "bv": s * jax.random.normal(ks[5], (vdim,), jnp.float32),
        "wo": s * jax.random.normal(ks[6], (c, vdim), jnp.float32),
        "bo": s * jax.random.normal(ks[7], (c,), jnp.float32),
    }


if __name__ == "__main__":
    B, S, C = 64, 8, 32        # batch (rays), n_cams (sequence), channels
    KDIM, VDIM = 32, 32        # -> rows = 256 per step, 2 parallel grid steps

    key = jax.random.PRNGKey(0)
    kx, kp = jax.random.split(key)
    x = jax.random.normal(kx, (B, S, C), jnp.float32)
    params = _init_params(kp, C, KDIM, VDIM)
    fused = prepare_params(params)

    out = jax.block_until_ready(collapse_cams_block(x, fused))
    ref = jax.block_until_ready(_reference(x, params))

    # bf16 MXU operands + the EUP's approximate reciprocal introduce O(1e-3)
    # absolute error vs. the pure-f32 reference; the semantics are otherwise
    # exact (scale folding, diagonal mask, residual all match the module).
    np.testing.assert_allclose(np.asarray(out), np.asarray(ref),
                               rtol=2e-2, atol=2e-2)
    print("KERNEL_OK")
</pallas_src>

<mosaic_0001>
module attributes {stable_mosaic.version = 11 : i64} {
  func.func @_collapse_cams_kernel(%arg0: i32, %arg1: memref<1x32x256xf32, #tpu.memory_space<vmem>>, %arg2: memref<96x32xbf16, #tpu.memory_space<vmem>>, %arg3: memref<96x1xf32, #tpu.memory_space<vmem>>, %arg4: memref<32x32xbf16, #tpu.memory_space<vmem>>, %arg5: memref<32x1xf32, #tpu.memory_space<vmem>>, %arg6: memref<256x256xf32, #tpu.memory_space<vmem>>, %arg7: memref<1x32x256xf32, #tpu.memory_space<vmem>>) attributes {dimension_semantics = [#tpu.dimension_semantics<parallel>], iteration_bounds = array<i64: 2>, scalar_prefetch = 0 : i64, scratch_operands = 0 : i64, tpu.core_type = #tpu.core_type<tc>, window_params = [{transform_indices = @transform_0, window_bounds = array<i64: 1, 32, 256>}, {pipeline_mode = #tpu.pipeline_mode<synchronous>, transform_indices = @transform_1, window_bounds = array<i64: 96, 32>}, {pipeline_mode = #tpu.pipeline_mode<synchronous>, transform_indices = @transform_2, window_bounds = array<i64: 96, 1>}, {pipeline_mode = #tpu.pipeline_mode<synchronous>, transform_indices = @transform_3, window_bounds = array<i64: 32, 32>}, {pipeline_mode = #tpu.pipeline_mode<synchronous>, transform_indices = @transform_4, window_bounds = array<i64: 32, 1>}, {pipeline_mode = #tpu.pipeline_mode<synchronous>, transform_indices = @transform_5, window_bounds = array<i64: 256, 256>}, {transform_indices = @transform_6, window_bounds = array<i64: 1, 32, 256>}]} {
    %c0 = arith.constant 0 : index
    %c0_0 = arith.constant 0 : index
    %c0_1 = arith.constant 0 : index
    %0 = vector.load %arg1[%c0, %c0_0, %c0_1] : memref<1x32x256xf32, #tpu.memory_space<vmem>>, vector<1x32x256xf32>
    %1 = vector.shape_cast %0 : vector<1x32x256xf32> to vector<32x256xf32>
    %c0_2 = arith.constant 0 : index
    %c0_3 = arith.constant 0 : index
    %2 = vector.load %arg2[%c0_2, %c0_3] : memref<96x32xbf16, #tpu.memory_space<vmem>>, vector<96x32xbf16>
    %3 = arith.truncf %1 : vector<32x256xf32> to vector<32x256xbf16>
    %cst = arith.constant dense<0.000000e+00> : vector<96x256xf32>
    %4 = tpu.matmul %2, %3, %cst {dimension_numbers = #tpu.dot_dimension_numbers<[1], [0], [0], [1], [0, 0, 1, 1], [], []>} : vector<96x32xbf16>, vector<32x256xbf16>, vector<96x256xf32> -> vector<96x256xf32>
    %c0_4 = arith.constant 0 : index
    %c0_5 = arith.constant 0 : index
    %5 = vector.load %arg3[%c0_4, %c0_5] : memref<96x1xf32, #tpu.memory_space<vmem>>, vector<96x1xf32>
    %6 = vector.broadcast %5 : vector<96x1xf32> to vector<96x256xf32>
    %7 = arith.addf %4, %6 : vector<96x256xf32>
    %8 = vector.extract_strided_slice %7 {offsets = [0, 0], sizes = [32, 256], strides = [1, 1]} : vector<96x256xf32> to vector<32x256xf32>
    %9 = vector.extract_strided_slice %7 {offsets = [32, 0], sizes = [32, 256], strides = [1, 1]} : vector<96x256xf32> to vector<32x256xf32>
    %10 = vector.extract_strided_slice %7 {offsets = [64, 0], sizes = [32, 256], strides = [1, 1]} : vector<96x256xf32> to vector<32x256xf32>
    %11 = tpu.transpose %8, [1, 0] : vector<32x256xf32> -> vector<256x32xf32>
    %12 = arith.truncf %11 : vector<256x32xf32> to vector<256x32xbf16>
    %13 = arith.truncf %9 : vector<32x256xf32> to vector<32x256xbf16>
    %cst_6 = arith.constant dense<0.000000e+00> : vector<256x256xf32>
    %14 = tpu.matmul %12, %13, %cst_6 {dimension_numbers = #tpu.dot_dimension_numbers<[1], [0], [0], [1], [0, 0, 1, 1], [], []>} : vector<256x32xbf16>, vector<32x256xbf16>, vector<256x256xf32> -> vector<256x256xf32>
    %c0_7 = arith.constant 0 : index
    %c0_8 = arith.constant 0 : index
    %15 = vector.load %arg6[%c0_7, %c0_8] : memref<256x256xf32, #tpu.memory_space<vmem>>, vector<256x256xf32>
    %16 = arith.addf %14, %15 : vector<256x256xf32>
    %cst_9 = arith.constant dense<0xFF800000> : vector<256xf32>
    %17 = vector.multi_reduction <maximumf>, %16, %cst_9 [1] : vector<256x256xf32> to vector<256xf32>
    %18 = vector.shape_cast %17 : vector<256xf32> to vector<256x1xf32>
    %19 = vector.broadcast %18 : vector<256x1xf32> to vector<256x256xf32>
    %20 = arith.subf %16, %19 : vector<256x256xf32>
    %21 = math.exp %20 : vector<256x256xf32>
    %cst_10 = arith.constant dense<0.000000e+00> : vector<256xf32>
    %22 = vector.multi_reduction <add>, %21, %cst_10 [1] : vector<256x256xf32> to vector<256xf32>
    %23 = vector.shape_cast %22 : vector<256xf32> to vector<256x1xf32>
    %24 = tpu.reciprocal %23 {approx = true} : vector<256x1xf32> -> vector<256x1xf32>
    %25 = vector.broadcast %24 : vector<256x1xf32> to vector<256x256xf32>
    %26 = arith.mulf %21, %25 : vector<256x256xf32>
    %27 = arith.truncf %10 : vector<32x256xf32> to vector<32x256xbf16>
    %28 = arith.truncf %26 : vector<256x256xf32> to vector<256x256xbf16>
    %cst_11 = arith.constant dense<0.000000e+00> : vector<32x256xf32>
    %29 = tpu.matmul %27, %28, %cst_11 {dimension_numbers = #tpu.dot_dimension_numbers<[1], [1], [0], [0], [0, 0, 1, 0], [], []>} : vector<32x256xbf16>, vector<256x256xbf16>, vector<32x256xf32> -> vector<32x256xf32>
    %c0_12 = arith.constant 0 : index
    %c0_13 = arith.constant 0 : index
    %30 = vector.load %arg4[%c0_12, %c0_13] : memref<32x32xbf16, #tpu.memory_space<vmem>>, vector<32x32xbf16>
    %31 = arith.truncf %29 : vector<32x256xf32> to vector<32x256xbf16>
    %cst_14 = arith.constant dense<0.000000e+00> : vector<32x256xf32>
    %32 = tpu.matmul %30, %31, %cst_14 {dimension_numbers = #tpu.dot_dimension_numbers<[1], [0], [0], [1], [0, 0, 1, 1], [], []>} : vector<32x32xbf16>, vector<32x256xbf16>, vector<32x256xf32> -> vector<32x256xf32>
    %33 = arith.addf %1, %32 : vector<32x256xf32>
    %c0_15 = arith.constant 0 : index
    %c0_16 = arith.constant 0 : index
    %34 = vector.load %arg5[%c0_15, %c0_16] : memref<32x1xf32, #tpu.memory_space<vmem>>, vector<32x1xf32>
    %35 = vector.broadcast %34 : vector<32x1xf32> to vector<32x256xf32>
    %36 = arith.addf %33, %35 : vector<32x256xf32>
    %c0_17 = arith.constant 0 : index
    %c0_18 = arith.constant 0 : index
    %c0_19 = arith.constant 0 : index
    %37 = vector.load %arg7[%c0_17, %c0_18, %c0_19] : memref<1x32x256xf32, #tpu.memory_space<vmem>>, vector<1x32x256xf32>
    %38 = vector.shape_cast %37 : vector<1x32x256xf32> to vector<32x256xf32>
    %39 = vector.shape_cast %36 : vector<32x256xf32> to vector<1x32x256xf32>
    tpu.vector_store %arg7[%c0_17, %c0_18, %c0_19], %39 {strides = array<i32>} : memref<1x32x256xf32, #tpu.memory_space<vmem>>, vector<1x32x256xf32>,
    return
  }
  func.func @transform_0(%arg0: i32) -> (i32, i32, i32) {
    %c0_i32 = arith.constant 0 : i32
    %c0_i32_0 = arith.constant 0 : i32
    %c0_i32_1 = arith.constant 0 : i32
    return %arg0, %c0_i32, %c0_i32_0 : i32, i32, i32
  }
  func.func @transform_1(%arg0: i32) -> (i32, i32) {
    %c0_i32 = arith.constant 0 : i32
    %c0_i32_0 = arith.constant 0 : i32
    %c0_i32_1 = arith.constant 0 : i32
    return %c0_i32, %c0_i32_0 : i32, i32
  }
  func.func @transform_2(%arg0: i32) -> (i32, i32) {
    %c0_i32 = arith.constant 0 : i32
    %c0_i32_0 = arith.constant 0 : i32
    %c0_i32_1 = arith.constant 0 : i32
    return %c0_i32, %c0_i32_0 : i32, i32
  }
  func.func @transform_3(%arg0: i32) -> (i32, i32) {
    %c0_i32 = arith.constant 0 : i32
    %c0_i32_0 = arith.constant 0 : i32
    %c0_i32_1 = arith.constant 0 : i32
    return %c0_i32, %c0_i32_0 : i32, i32
  }
  func.func @transform_4(%arg0: i32) -> (i32, i32) {
    %c0_i32 = arith.constant 0 : i32
    %c0_i32_0 = arith.constant 0 : i32
    %c0_i32_1 = arith.constant 0 : i32
    return %c0_i32, %c0_i32_0 : i32, i32
  }
  func.func @transform_5(%arg0: i32) -> (i32, i32) {
    %c0_i32 = arith.constant 0 : i32
    %c0_i32_0 = arith.constant 0 : i32
    %c0_i32_1 = arith.constant 0 : i32
    return %c0_i32, %c0_i32_0 : i32, i32
  }
  func.func @transform_6(%arg0: i32) -> (i32, i32, i32) {
    %c0_i32 = arith.constant 0 : i32
    %c0_i32_0 = arith.constant 0 : i32
    %c0_i32_1 = arith.constant 0 : i32
    return %arg0, %c0_i32, %c0_i32_0 : i32, i32, i32
  }
}

</mosaic_0001>

<bundles_post_ra>
// kernel: tpu_custom_call.1
= control target key start
LH: loop header
LB: loop body
LE: loop exit
PB: predicated region body
PF: predicated region fallthrough
CT: control target
= control target key end

     0   :  { %11 = vsyncpa [#allocation3], 0  ;;  %s3000_s0 = inlined_call_operand.vmem [shape: f32[2,32,256], index: 0, kind: input, shape index: {}]   ;;  %s3001_s1 = inlined_call_operand.vmem [shape: bf16[96,32], index: 1, kind: input, shape index: {}]   ;;  %s3002_s2 = inlined_call_operand.vmem [shape: f32[96,1], index: 2, kind: input, shape index: {}]   ;;  %s3003_s3 = inlined_call_operand.vmem [shape: bf16[32,32], index: 3, kind: input, shape index: {}]   ;;  %s3004_s4 = inlined_call_operand.vmem [shape: f32[32,1], index: 4, kind: input, shape index: {}]   ;;  %s3005_s5 = inlined_call_operand.hbm [shape: f32[256,256], index: 5, kind: input, shape index: {}]   ;;  %s3006_s6 = inlined_call_operand.hbm [shape: f32[2,32,256], index: 6, kind: output, shape index: {}]  }
   0x1   :  { %12 = vsyncpa [#allocation4], 0 }
   0x2   :  { %14 = vsyncpa [#allocation4 + $0x1], 0  ;;  %s2127_s21 = smov 0   ;;  %s2129_s22 = smov 0  }
   0x3   :  { %s2131_s23 = smov 0   ;;  %s2133_s24 = smov 0  }
   0x4 LB: > { %s2148_s25 = sadd.s32 4294967295, %s2083_s24   ;;  %s1675_s26 = sadd.s32 4294967294, %s2083_s24   ;;  %s2083_s24 = sphi %s2133_s24, %s3104_s24   ;;  %s2079_s23 = sphi %s2131_s23, %s3103_s23   ;;  %s2075_s22 = sphi %s2129_s22, %s3102_s22   ;;  %s2071_s21 = sphi %s2127_s21, %s3101_s21  }
   0x5   : > { %s2152_s27 = sadd.s32 1, %s2083_s24   ;;  %s158_s28 = sadd.s32 1, %s2079_s23 }
   0x6   : > { %s155_s29 = ssub.s32 %s2083_s24, %s2152_s27  ;;  %p168_p0 = scmp.ne.s32.totalorder %s2079_s23, %s2075_s22 }
   0x7   : > { %p156_p1 = scmp.eq.s32.totalorder %s155_s29, 0  ;;  %p169_p2 = scmp.eq.s32.totalorder %s2148_s25, 1 }
   0x8   : > { %p174_p3 = scmp.ne.s32.totalorder %s2075_s22, %s2071_s21  ;;  %p175_p4 = scmp.eq.s32.totalorder %s1675_s26, 1 }
   0x9   : > { %s2163_s30 = scalar_select %p156_p1, %s2079_s23, %s158_s28  }
   0xa   : > { %p2165_p5 = por %p169_p2, %p168_p0  ;;  %p2169_p6 = por %p175_p4, %p174_p3 }
   0xb   : > { %p1676_p7 = scmp.ge.s32.totalorder %s2083_s24, 1  ;;  %p182_p8 = scmp.lt.s32.totalorder %s2083_s24, 3 }
   0xc   : > { %s3038_s7 = scalar_select %p2165_p5, 1, 0 }
   0xd   : > { %s3039_s8 = scalar_select %p2169_p6, 1, 0 }
   0xe   : > { %p3007_p9 = scmp.eq.s32.totalorder %s2148_s25, 0  ;;  %p2176_p10 = pnand %p1676_p7, %p182_p8 }
   0xf   : > { %s2085_s10 = smov [#allocation2]   ;;  %s1989_s15 = scalar_lea.hbm %s3005_s5, 8192 }
  0x10   : > { %s3040_s9 = scalar_select %p2176_p10, 1, 0 }
  0x11   : > { %s206_s11 = sshll.u32 %s2085_s10, 4  ;;  %p1729_p11 = pneg %p2176_p10  ;;  %s207_s11 = int_to_ptr.vmem [resolvable:$true] %s206_s11 }
  0x12   : > { %p1990_p13 = scmp.ne.s32.totalorder %s3005_s5, %s1989_s15  ;;  %p1996_p3 = scmp.lt.u32.totalorder %s1989_s15, %s3005_s5 }
  0x13   : > { %p2184_p12 = pnand %p3007_p9, %p1729_p11 }
  0x15   : > { %p1991_p0 = pneg %p2184_p12 }
  0x17   : > { %p1992_p1 = pnand %p1991_p0, %p1990_p13 }
  0x19   : > { %p1993_p2 = pneg %p1992_p1 }
  0x1b   : > { %p1998_p4 = pnand %p1996_p3, %p1993_p2 }
  0x1d   : > { %2001 = shalt.err (!%p1998_p4)
}
  0x1e   : > { %s2002_s20 = scalar_lea.vmem %s207_s11, 8192  ;;  %p2010_p9 = scmp.lt.s32.totalorder %s207_s11, %s207_s11 }
  0x1f   : > { %p2003_p7 = scmp.ne.s32.totalorder %s207_s11, %s2002_s20  ;;  %p2011_p6 = scmp.lt.s32.totalorder %s2002_s20, %s2002_s20 }
  0x21   : > { %p2005_p8 = pnand %p2003_p7, %p1991_p0  ;;  %p2012_p5 = por %p2011_p6, %p2010_p9 }
  0x23   : > { %p2006_p11 = pneg %p2005_p8 }
  0x25   : > { %p2013_p10 = pnand %p2012_p5, %p2006_p11 }
  0x27   : > { %2016 = shalt.err (!%p2013_p10)
}
  0x28   : > { %s2086_s26 = smov 256   ;;  %s2087_s28 = smov 16  }
  0x29   : > { %1732 = dma.hbm_to_vmem [thread:$0]  (!%p2184_p12), %s3005_s5, 8192, %s207_s11, [#allocation3], %s2086_s26, %s2086_s26, %s2087_s28  }
  0x2a   : > { %p3042_p13 = scmp.ne.s32.totalorder %s3040_s9, 0 }
  0x2c   : > { %230 = sbr.rel (%p3042_p13) target bundleno = 1658 (0x67a), region = 44 }
  0x33   : > { %p3043_p1 = scmp.eq.s32.totalorder %s2148_s25, 0 }
  0x35   : > { %2062 = dma.done.wait (%p3043_p1), [#allocation3], 8192   ;;  %p3044_p0 = pmov %p3043_p1 }
  0x36   : > { %p260_p5 = scmp.lt.s32.totalorder %s2148_s25, 1  ;;  %v3010_v0 = vmov 0   ;;  %v290_v13 = vld [vmem:[%s3002_s2] sm:$0xff]  ;;  %v292_v15 = vld [vmem:[%s3002_s2 + $0x10] sm:$0xff]  ;;  %vm392_vm0 = vcmask 261120   ;;  %v291_v16 = vld [vmem:[%s3002_s2 + $0x8] sm:$0xff] }
  0x37   : > { %2064 = vsyncadd (%p3044_p0), [#allocation3], 4294959104  ;;  %443 = vmatprep.mubr.bf16.mxu0 %v3010_v0  ;;  %1779 = vset.pattern.permute.xlu0 %v3010_v0  ;;  %v1781_v14 = vld [vmem:[%s3001_s1] sm:$0xff]   ;;  %v293_v17 = vld [vmem:[%s3002_s2 + $0x18] sm:$0xff]  ;;  %s257_s26 = sand.u32 1, %s2075_s22   ;;  %p3099_p9 = scmp.ne.s32.totalorder %s3038_s7, 0 }
  0x38   : > { %s261_s12 = scalar_select %p260_p5, %s2148_s25, 1  ;;  %1780 = vset.pattern.permute.xlu1 %v3010_v0  ;;  %732 = vmatprep.mubr.bf16.mxu1 %v3010_v0  ;;  %v294_v18 = vld [vmem:[%s3002_s2 + $0x20] sm:$0xff]  ;;  %v295_v19 = vld [vmem:[%s3002_s2 + $0x28] sm:$0xff]  ;;  %v296_v21 = vld [vmem:[%s3002_s2 + $0x30] sm:$0xff] }
  0x39   : > { %304 = vperm.xlu0 %1779, %v290_v13   ;;  %314 = vperm.xlu1 %1780, %v292_v15   ;;  %v1782_v20 = vld [vmem:[%s3001_s1 + $0x8] sm:$0xff]   ;;  %v297_v22 = vld [vmem:[%s3002_s2 + $0x38] sm:$0xff]  ;;  %v1783_v23 = vld [vmem:[%s3001_s1 + $0x10] sm:$0xff]   ;;  %s1681_s28 = sshll.u32 %s257_s26, 6  ;;  %s2089_s15 = smov [#allocation5]  }
  0x3a   : > { %s1721_s9 = sshll.u32 %s261_s12, 6  ;;  %v1784_v24 = vld [vmem:[%s3001_s1 + $0x18] sm:$0xff]   ;;  %s2934_s29 = scalar_lea.vmem [#allocation5], %s1681_s28 }
  0x3b   : > { %s2219_s14 = scalar_lea.vmem %s3000_s0, %s1721_s9  ;;  %s1601_s10 = sshll.u32 %s2934_s29, 4  ;;  %s2946_s10 = int_to_ptr.vmem [resolvable:$true] %s1601_s10 }
  0x3c   : > { %v267_v1 = vld [vmem:[%s2219_s14 + $0x8] sm:$0xff]  ;;  %v269_v2 = vld [vmem:[%s2219_s14 + $0x18] sm:$0xff]  ;;  %v266_v3 = vld [vmem:[%s2219_s14] sm:$0xff]  ;;  %s1722_s12 = sshll.u32 %s2148_s25, 10  ;;  %s2959_s25 = scalar_lea.sflag [#allocation4], %s257_s26 }
  0x3d   : > { %v287_v4 = vpack.c.bf16 %v269_v2, %v267_v1  ;;  %v268_v5 = vld [vmem:[%s2219_s14 + $0x10] sm:$0xff]  ;;  %v271_v6 = vld [vmem:[%s2219_s14 + $0x28] sm:$0xff]  ;;  %v273_v7 = vld [vmem:[%s2219_s14 + $0x38] sm:$0xff]  ;;  %309 = vperm.xlu0 %1779, %v291_v16   ;;  %319 = vperm.xlu1 %1780, %v293_v17   ;;  %s2953_s13 = scalar_lea.hbm %s3006_s6, %s1722_s12  ;;  %s2021_s16 = sshll.u32 %s2089_s15, 4  ;;  %s2022_s16 = int_to_ptr.vmem [resolvable:$false] %s2021_s16 }
  0x3e   : > { %v286_v8 = vpack.c.bf16 %v268_v5, %v266_v3  ;;  %v289_v9 = vpack.c.bf16 %v273_v7, %v271_v6  ;;  %v270_v10 = vld [vmem:[%s2219_s14 + $0x20] sm:$0xff]  ;;  %v272_v11 = vld [vmem:[%s2219_s14 + $0x30] sm:$0xff]  ;;  %s2023_s17 = scalar_lea.vmem %s2022_s16, 2048  ;;  %p2024_p2 = scmp.lt.s32.totalorder %s2946_s10, %s2022_s16 }
  0x3f   : > { %411 = vmatprep.subr.bf16.mxu0 %v287_v4  ;;  %v288_v12 = vpack.c.bf16 %v272_v11, %v270_v10 }
  0x40   : > { %412 = vmatpush1.bf16.msra.mxu0 %v286_v8 }
  0x41   : > { %413 = vmatprep.subr.bf16.mxu0 %v289_v9  ;;  %324 = vperm.xlu0 %1779, %v294_v18  }
  0x42   : > { %329 = vperm.xlu1 %1780, %v295_v19  }
  0x44   : > { %414 = vmatpush1.bf16.msra.mxu0 %v288_v12 }
  0x45   : > { %334 = vperm.xlu0 %1779, %v296_v21  }
  0x46   : > { %339 = vperm.xlu1 %1780, %v297_v22  }
  0x47   : > { %1690 = vmatmul.mubr.msk.bf16.vlgmr.msra.gmra.mrb[0].mxu0 %vm392_vm0, %v1781_v14 }
  0x48   : > { %453 = vmatprep.mubr.bf16.mxu0 %v3010_v0 }
  0x4f   : > { %1691 = vmatmul.mubr.msk.bf16.gmra.mrb[4].mxu0 %vm392_vm0, %v1782_v20 }
  0x50   : > { %463 = vmatprep.mubr.bf16.mxu0 %v3010_v0 }
  0x57   : > { %1692 = vmatmul.mubr.msk.bf16.gmra.mrb[8].mxu0 %vm392_vm0, %v1783_v23 }
  0x58   : > { %473 = vmatprep.mubr.bf16.mxu0 %v3010_v0 }
  0x5f   : > { %1693 = vmatmul.mubr.msk.bf16.gmra.mrb[12].mxu0 %vm392_vm0, %v1784_v24 }
  0x60   : > { %483 = vmatprep.mubr.bf16.mxu0 %v3010_v0 }
  0xb8   : > { %v305_v25 = vpop.permute.xlu0 %304  ;;  %v315_v34 = vpop.permute.xlu1 %314 }
  0xbc   : > { %v310_v32 = vpop.permute.xlu0 %309  ;;  %v320_v42 = vpop.permute.xlu1 %319 }
  0xc0   : > { %v325_v46 = vpop.permute.xlu0 %324 }
  0xc1   : > { %v330_v48 = vpop.permute.xlu1 %329 }
  0xc4   : > { %v335_v58 = vpop.permute.xlu0 %334 }
  0xc5   : > { %v340_v60 = vpop.permute.xlu1 %339 }
 0x11a   : > { %v445_v26 = vpop.f32.mrb[0].mxu0 }
 0x11b   : > { %v446_v27 = vadd.f32 %v445_v26, %v305_v25  ;;  %v447_v28 = vpop.f32.mrb[1].mxu0 }
 0x11c   : > { %v448_v29 = vadd.f32 %v447_v28, %v305_v25  ;;  %v449_v30 = vpop.f32.mrb[2].mxu0 }
 0x11d   : > { %v451_v31 = vpop.f32.mrb[3].mxu0  ;;  %504 = vxpose.xlu0.b32.start [1/4] (short) %v446_v27, 128  ;;  %v450_v33 = vadd.f32 %v449_v30, %v310_v32 }
 0x11e   : > { %536 = vxpose.xlu1.b32.start [1/4] (short) %v448_v29, 128  ;;  %v452_v35 = vadd.f32 %v451_v31, %v310_v32 }
 0x121   : > { %505 = vxpose.xlu0.b32.cont [2/4] (short) %v450_v33, 128 }
 0x122   : > { %v455_v36 = vpop.f32.mrb[4].mxu0  ;;  %537 = vxpose.xlu1.b32.cont [2/4] (short) %v452_v35, 128 }
 0x123   : > { %v456_v37 = vadd.f32 %v455_v36, %v315_v34  ;;  %v457_v38 = vpop.f32.mrb[5].mxu0 }
 0x124   : > { %v458_v39 = vadd.f32 %v457_v38, %v315_v34  ;;  %v459_v40 = vpop.f32.mrb[6].mxu0 }
 0x125   : > { %v461_v41 = vpop.f32.mrb[7].mxu0  ;;  %506 = vxpose.xlu0.b32.cont [3/4] (short) %v456_v37, 128  ;;  %v460_v43 = vadd.f32 %v459_v40, %v320_v42 }
 0x126   : > { %538 = vxpose.xlu1.b32.cont [3/4] (short) %v458_v39, 128  ;;  %v462_v44 = vadd.f32 %v461_v41, %v320_v42 }
 0x129   : > { %507 = vxpose.xlu0.b32.end [4/4] (short) %v460_v43, 128 }
 0x12a   : > { %v465_v45 = vpop.f32.mrb[8].mxu0  ;;  %539 = vxpose.xlu1.b32.end [4/4] (short) %v462_v44, 128 }
 0x12b   : > { %v467_v47 = vpop.f32.mrb[9].mxu0  ;;  %v466_v50 = vadd.f32 %v465_v45, %v325_v46 }
 0x12c   : > { %v469_v49 = vpop.f32.mrb[10].mxu0  ;;  %v468_v53 = vadd.f32 %v467_v47, %v325_v46 }
 0x12d   : > { %v470_v51 = vadd.f32 %v469_v49, %v330_v48  ;;  %v471_v52 = vpop.f32.mrb[11].mxu0 }
 0x12e   : > { %v472_v54 = vadd.f32 %v471_v52, %v330_v48 }
 0x12f   : > { %v584_v55 = vpack.c.bf16 %v470_v51, %v466_v50 }
 0x130   : > { %v585_v56 = vpack.c.bf16 %v472_v54, %v468_v53  ;;  %v588_v54 = vld [vmem:[#allocation2] sm:$0xff] }
 0x132   : > { %v475_v57 = vpop.f32.mrb[12].mxu0  ;;  %700 = vmatprep.subr.bf16.mxu1 %v585_v56 }
 0x133   : > { %v477_v59 = vpop.f32.mrb[13].mxu0  ;;  %701 = vmatpush1.bf16.msra.mxu1 %v584_v55  ;;  %v476_v62 = vadd.f32 %v475_v57, %v335_v58  ;;  %v589_v55 = vld [vmem:[#allocation2 + $0x8] sm:$0xff]  ;;  %v590_v57 = vld [vmem:[#allocation2 + $0x10] sm:$0xff] }
 0x134   : > { %v479_v61 = vpop.f32.mrb[14].mxu0  ;;  %v478_v2 = vadd.f32 %v477_v59, %v335_v58 }
 0x135   : > { %v480_v63 = vadd.f32 %v479_v61, %v340_v60  ;;  %v481_v1 = vpop.f32.mrb[15].mxu0 }
 0x136   : > { %v482_v3 = vadd.f32 %v481_v1, %v340_v60  ;;  %v591_v60 = vld [vmem:[#allocation2 + $0x18] sm:$0xff] }
 0x137   : > { %v586_v4 = vpack.c.bf16 %v480_v63, %v476_v62 }
 0x138   : > { %v587_v5 = vpack.c.bf16 %v482_v3, %v478_v2 }
 0x13a   : > { %702 = vmatprep.subr.bf16.mxu1 %v587_v5  ;;  %v592_v5 = vld [vmem:[#allocation2 + $0x20] sm:$0xff] }
 0x13b   : > { %703 = vmatpush1.bf16.msra.mxu1 %v586_v4 }
 0x19d   : > { %v520_v6 = vpop.trf.xlu0 }
 0x19e   : > { %v552_v19 = vpop.trf.xlu1 }
 0x1a1   : > { %v521_v7 = vpop.trf.xlu0 }
 0x1a2   : > { %v568_v8 = vpack.c.bf16 %v521_v7, %v520_v6  ;;  %v553_v23 = vpop.trf.xlu1  ;;  %v593_v6 = vld [vmem:[#allocation2 + $0x28] sm:$0xff] }
 0x1a3   : > { %v576_v36 = vpack.c.bf16 %v553_v23, %v552_v19 }
 0x1a4   : > { %1696 = vmatmul.mubr.msk.bf16.vlgmr.msra.gmra.mrb[0].mxu1 %vm392_vm0, %v568_v8  ;;  %v594_v8 = vld [vmem:[#allocation2 + $0x30] sm:$0xff] }
 0x1a5   : > { %v522_v9 = vpop.trf.xlu0  ;;  %742 = vmatprep.mubr.bf16.mxu1 %v3010_v0 }
 0x1a6   : > { %v554_v26 = vpop.trf.xlu1 }
 0x1a9   : > { %v523_v10 = vpop.trf.xlu0 }
 0x1aa   : > { %v569_v11 = vpack.c.bf16 %v523_v10, %v522_v9  ;;  %v555_v29 = vpop.trf.xlu1 }
 0x1ab   : > { %v577_v38 = vpack.c.bf16 %v555_v29, %v554_v26 }
 0x1ac   : > { %1697 = vmatmul.mubr.msk.bf16.gmra.mrb[4].mxu1 %vm392_vm0, %v569_v11  ;;  %v595_v11 = vld [vmem:[#allocation2 + $0x38] sm:$0xff] }
 0x1ad   : > { %v524_v12 = vpop.trf.xlu0  ;;  %752 = vmatprep.mubr.bf16.mxu1 %v3010_v0 }
 0x1ae   : > { %v556_v32 = vpop.trf.xlu1 }
 0x1b1   : > { %v525_v13 = vpop.trf.xlu0 }
 0x1b2   : > { %v570_v14 = vpack.c.bf16 %v525_v13, %v524_v12  ;;  %v557_v35 = vpop.trf.xlu1 }
 0x1b3   : > { %v578_v41 = vpack.c.bf16 %v557_v35, %v556_v32 }
 0x1b4   : > { %1698 = vmatmul.mubr.msk.bf16.gmra.mrb[8].mxu1 %vm392_vm0, %v570_v14 }
 0x1b5   : > { %v526_v15 = vpop.trf.xlu0  ;;  %762 = vmatprep.mubr.bf16.mxu1 %v3010_v0 }
 0x1b6   : > { %v558_v37 = vpop.trf.xlu1 }
 0x1b9   : > { %v527_v16 = vpop.trf.xlu0 }
 0x1ba   : > { %v571_v17 = vpack.c.bf16 %v527_v16, %v526_v15  ;;  %v559_v39 = vpop.trf.xlu1 }
 0x1bb   : > { %v579_v43 = vpack.c.bf16 %v559_v39, %v558_v37  ;;  %v603_v39 = vld [vmem:[#allocation2 + $0x78] sm:$0xff] }
 0x1bc   : > { %1699 = vmatmul.mubr.msk.bf16.gmra.mrb[12].mxu1 %vm392_vm0, %v571_v17 }
 0x1bd   : > { %v528_v18 = vpop.trf.xlu0  ;;  %772 = vmatprep.mubr.bf16.mxu1 %v3010_v0 }
 0x1be   : > { %v560_v40 = vpop.trf.xlu1 }
 0x1c1   : > { %v529_v20 = vpop.trf.xlu0 }
 0x1c2   : > { %v572_v21 = vpack.c.bf16 %v529_v20, %v528_v18  ;;  %v561_v42 = vpop.trf.xlu1  ;;  %v596_v18 = vld [vmem:[#allocation2 + $0x40] sm:$0xff]  ;;  %v597_v20 = vld [vmem:[#allocation2 + $0x48] sm:$0xff] }
 0x1c3   : > { %v580_v46 = vpack.c.bf16 %v561_v42, %v560_v40 }
 0x1c4   : > { %1700 = vmatmul.mubr.msk.bf16.gmra.mrb[16].mxu1 %vm392_vm0, %v572_v21 }
 0x1c5   : > { %v530_v22 = vpop.trf.xlu0  ;;  %782 = vmatprep.mubr.bf16.mxu1 %v3010_v0 }
 0x1c6   : > { %v562_v44 = vpop.trf.xlu1 }
 0x1c9   : > { %v531_v24 = vpop.trf.xlu0 }
 0x1ca   : > { %v573_v25 = vpack.c.bf16 %v531_v24, %v530_v22  ;;  %v563_v45 = vpop.trf.xlu1  ;;  %v598_v22 = vld [vmem:[#allocation2 + $0x50] sm:$0xff] }
 0x1cb   : > { %v581_v48 = vpack.c.bf16 %v563_v45, %v562_v44 }
 0x1cc   : > { %1701 = vmatmul.mubr.msk.bf16.gmra.mrb[20].mxu1 %vm392_vm0, %v573_v25  ;;  %v599_v25 = vld [vmem:[#allocation2 + $0x58] sm:$0xff] }
 0x1cd   : > { %v532_v27 = vpop.trf.xlu0  ;;  %792 = vmatprep.mubr.bf16.mxu1 %v3010_v0 }
 0x1ce   : > { %v564_v47 = vpop.trf.xlu1 }
 0x1d1   : > { %v533_v28 = vpop.trf.xlu0 }
 0x1d2   : > { %v574_v30 = vpack.c.bf16 %v533_v28, %v532_v27  ;;  %v565_v49 = vpop.trf.xlu1 }
 0x1d3   : > { %v582_v51 = vpack.c.bf16 %v565_v49, %v564_v47  ;;  %v604_v47 = vld [vmem:[#allocation2 + $0x80] sm:$0xff] }
 0x1d4   : > { %1702 = vmatmul.mubr.msk.bf16.gmra.mrb[24].mxu1 %vm392_vm0, %v574_v30 }
 0x1d5   : > { %v534_v31 = vpop.trf.xlu0  ;;  %802 = vmatprep.mubr.bf16.mxu1 %v3010_v0 }
 0x1d6   : > { %v566_v50 = vpop.trf.xlu1 }
 0x1d9   : > { %v535_v33 = vpop.trf.xlu0 }
 0x1da   : > { %v575_v34 = vpack.c.bf16 %v535_v33, %v534_v31  ;;  %v567_v52 = vpop.trf.xlu1  ;;  %v600_v33 = vld [vmem:[#allocation2 + $0x60] sm:$0xff] }
 0x1db   : > { %v583_v53 = vpack.c.bf16 %v567_v52, %v566_v50  ;;  %v606_v50 = vld [vmem:[#allocation2 + $0x90] sm:$0xff] }
 0x1dc   : > { %1703 = vmatmul.mubr.msk.bf16.gmra.mrb[28].mxu1 %vm392_vm0, %v575_v34  ;;  %v601_v34 = vld [vmem:[#allocation2 + $0x68] sm:$0xff] }
 0x1dd   : > { %812 = vmatprep.mubr.bf16.mxu1 %v3010_v0 }
 0x1e4   : > { %1704 = vmatmul.mubr.msk.bf16.gmra.mrb[32].mxu1 %vm392_vm0, %v576_v36  ;;  %v602_v36 = vld [vmem:[#allocation2 + $0x70] sm:$0xff] }
 0x1e5   : > { %822 = vmatprep.mubr.bf16.mxu1 %v3010_v0 }
 0x1ec   : > { %1705 = vmatmul.mubr.msk.bf16.gmra.mrb[36].mxu1 %vm392_vm0, %v577_v38 }
 0x1ed   : > { %832 = vmatprep.mubr.bf16.mxu1 %v3010_v0 }
 0x1f4   : > { %1706 = vmatmul.mubr.msk.bf16.gmra.mrb[40].mxu1 %vm392_vm0, %v578_v41 }
 0x1f5   : > { %842 = vmatprep.mubr.bf16.mxu1 %v3010_v0 }
 0x1fc   : > { %1707 = vmatmul.mubr.msk.bf16.gmra.mrb[44].mxu1 %vm392_vm0, %v579_v43 }
 0x1fd   : > { %852 = vmatprep.mubr.bf16.mxu1 %v3010_v0 }
 0x204   : > { %1708 = vmatmul.mubr.msk.bf16.gmra.mrb[48].mxu1 %vm392_vm0, %v580_v46 }
 0x205   : > { %862 = vmatprep.mubr.bf16.mxu1 %v3010_v0 }
 0x20c   : > { %1709 = vmatmul.mubr.msk.bf16.gmra.mrb[52].mxu1 %vm392_vm0, %v581_v48  ;;  %v605_v48 = vld [vmem:[#allocation2 + $0x88] sm:$0xff] }
 0x20d   : > { %872 = vmatprep.mubr.bf16.mxu1 %v3010_v0 }
 0x214   : > { %1710 = vmatmul.mubr.msk.bf16.gmra.mrb[56].mxu1 %vm392_vm0, %v582_v51 }
 0x215   : > { %882 = vmatprep.mubr.bf16.mxu1 %v3010_v0 }
 0x21c   : > { %1711 = vmatmul.mubr.msk.bf16.gmra.mrb[60].mxu1 %vm392_vm0, %v583_v53  ;;  %v607_v53 = vld [vmem:[#allocation2 + $0x98] sm:$0xff] }
 0x21d   : > { %1518 = vmatprep.mubr.bf16.mxu1 %v3010_v0 }
 0x277   : > { %v734_v56 = vpop.f32.mrb[0].mxu1 }
 0x278   : > { %v2305_v58 = vadd.f32 %v734_v56, %v588_v54  ;;  %v736_v59 = vpop.f32.mrb[1].mxu1 }
 0x279   : > { %v2307_v61 = vadd.f32 %v736_v59, %v589_v55  ;;  %v738_v62 = vpop.f32.mrb[2].mxu1 }
 0x27a   : > { %v2309_v63 = vadd.f32 %v738_v62, %v590_v57  ;;  %v740_v1 = vpop.f32.mrb[3].mxu1 }
 0x27b   : > { %v2311_v2 = vadd.f32 %v740_v1, %v591_v60  ;;  %v893_v3 = vmax.f32 %v2305_v58, %v2307_v61  ;;  %v608_v1 = vld [vmem:[#allocation2 + $0xa0] sm:$0xff] }
 0x27d   : > { %894 = vmax.xlane.f32.xlu0 %v893_v3  ;;  %v896_v4 = vmax.f32 %v2309_v63, %v2311_v2  ;;  %v609_v3 = vld [vmem:[#allocation2 + $0xa8] sm:$0xff] }
 0x27f   : > { %897 = vmax.xlane.f32.xlu1 %v896_v4  ;;  %v744_v7 = vpop.f32.mrb[4].mxu1 }
 0x280   : > { %v2317_v9 = vadd.f32 %v744_v7, %v592_v5  ;;  %v746_v10 = vpop.f32.mrb[5].mxu1  ;;  %v610_v5 = vld [vmem:[#allocation2 + $0xb0] sm:$0xff] }
 0x281   : > { %v2319_v12 = vadd.f32 %v746_v10, %v593_v6  ;;  %v748_v13 = vpop.f32.mrb[6].mxu1 }
 0x282   : > { %v2321_v14 = vadd.f32 %v748_v13, %v594_v8  ;;  %v750_v15 = vpop.f32.mrb[7].mxu1  ;;  %v611_v8 = vld [vmem:[#allocation2 + $0xb8] sm:$0xff] }
 0x283   : > { %v2323_v16 = vadd.f32 %v750_v15, %v595_v11  ;;  %v899_v17 = vmax.f32 %v2317_v9, %v2319_v12 }
 0x285   : > { %900 = vmax.xlane.f32.xlu0 %v899_v17  ;;  %v902_v19 = vmax.f32 %v2321_v14, %v2323_v16 }
 0x287   : > { %v754_v21 = vpop.f32.mrb[8].mxu1 }
 0x288   : > { %v2329_v23 = vadd.f32 %v754_v21, %v596_v18  ;;  %v756_v24 = vpop.f32.mrb[9].mxu1  ;;  %v613_v21 = vld [vmem:[#allocation2 + $0xc8] sm:$0xff] }
 0x289   : > { %v2331_v26 = vadd.f32 %v756_v24, %v597_v20  ;;  %903 = vmax.xlane.f32.xlu0 %v902_v19  ;;  %v758_v27 = vpop.f32.mrb[10].mxu1  ;;  %v612_v20 = vld [vmem:[#allocation2 + $0xc0] sm:$0xff]  ;;  %v614_v24 = vld [vmem:[#allocation2 + $0xd0] sm:$0xff] }
 0x28a   : > { %v2333_v28 = vadd.f32 %v758_v27, %v598_v22  ;;  %v760_v29 = vpop.f32.mrb[11].mxu1 }
 0x28b   : > { %v2335_v30 = vadd.f32 %v760_v29, %v599_v25  ;;  %v905_v31 = vmax.f32 %v2329_v23, %v2331_v26  ;;  %v615_v29 = vld [vmem:[#allocation2 + $0xd8] sm:$0xff] }
 0x28d   : > { %906 = vmax.xlane.f32.xlu1 %v905_v31  ;;  %v908_v32 = vmax.f32 %v2333_v28, %v2335_v30 }
 0x28f   : > { %909 = vmax.xlane.f32.xlu0 %v908_v32  ;;  %v764_v35 = vpop.f32.mrb[12].mxu1 }
 0x290   : > { %v2341_v37 = vadd.f32 %v764_v35, %v600_v33  ;;  %v766_v38 = vpop.f32.mrb[13].mxu1 }
 0x291   : > { %v2343_v40 = vadd.f32 %v766_v38, %v601_v34  ;;  %v768_v41 = vpop.f32.mrb[14].mxu1 }
 0x292   : > { %v2345_v42 = vadd.f32 %v768_v41, %v602_v36  ;;  %v770_v43 = vpop.f32.mrb[15].mxu1  ;;  %v617_v41 = vld [vmem:[#allocation2 + $0xe8] sm:$0xff] }
 0x293   : > { %v2347_v44 = vadd.f32 %v770_v43, %v603_v39  ;;  %v911_v45 = vmax.f32 %v2341_v37, %v2343_v40  ;;  %v616_v39 = vld [vmem:[#allocation2 + $0xe0] sm:$0xff] }
 0x295   : > { %912 = vmax.xlane.f32.xlu1 %v911_v45  ;;  %v914_v46 = vmax.f32 %v2345_v42, %v2347_v44  ;;  %v618_v45 = vld [vmem:[#allocation2 + $0xf0] sm:$0xff] }
 0x297   : > { %915 = vmax.xlane.f32.xlu0 %v914_v46  ;;  %v774_v49 = vpop.f32.mrb[16].mxu1 }
 0x298   : > { %v2353_v51 = vadd.f32 %v774_v49, %v604_v47  ;;  %v776_v52 = vpop.f32.mrb[17].mxu1 }
 0x299   : > { %v2355_v54 = vadd.f32 %v776_v52, %v605_v48  ;;  %v778_v55 = vpop.f32.mrb[18].mxu1  ;;  %v619_v48 = vld [vmem:[#allocation2 + $0xf8] sm:$0xff] }
 0x29a   : > { %v2357_v56 = vadd.f32 %v778_v55, %v606_v50  ;;  %v780_v57 = vpop.f32.mrb[19].mxu1 }
 0x29b   : > { %v2359_v59 = vadd.f32 %v780_v57, %v607_v53  ;;  %v917_v60 = vmax.f32 %v2353_v51, %v2355_v54 }
 0x29d   : > { %918 = vmax.xlane.f32.xlu1 %v917_v60  ;;  %v920_v62 = vmax.f32 %v2357_v56, %v2359_v59  ;;  %v620_v60 = vld [vmem:[#allocation2 + $0x100] sm:$0xff] }
 0x29f   : > { %921 = vmax.xlane.f32.xlu0 %v920_v62  ;;  %v784_v4 = vpop.f32.mrb[20].mxu1 }
 0x2a0   : > { %v2365_v6 = vadd.f32 %v784_v4, %v608_v1  ;;  %v786_v7 = vpop.f32.mrb[21].mxu1  ;;  %v621_v1 = vld [vmem:[#allocation2 + $0x108] sm:$0xff]  ;;  %v622_v4 = vld [vmem:[#allocation2 + $0x110] sm:$0xff] }
 0x2a1   : > { %v2367_v10 = vadd.f32 %v786_v7, %v609_v3  ;;  %v788_v11 = vpop.f32.mrb[22].mxu1 }
 0x2a2   : > { %v2369_v13 = vadd.f32 %v788_v11, %v610_v5  ;;  %v790_v15 = vpop.f32.mrb[23].mxu1 }
 0x2a3   : > { %v2371_v17 = vadd.f32 %v790_v15, %v611_v8  ;;  %v923_v18 = vmax.f32 %v2365_v6, %v2367_v10  ;;  %v623_v8 = vld [vmem:[#allocation2 + $0x118] sm:$0xff] }
 0x2a5   : > { %924 = vmax.xlane.f32.xlu1 %v923_v18  ;;  %v926_v19 = vmax.f32 %v2369_v13, %v2371_v17 }
 0x2a7   : > { %927 = vmax.xlane.f32.xlu0 %v926_v19  ;;  %v794_v22 = vpop.f32.mrb[24].mxu1 }
 0x2a8   : > { %v2377_v25 = vadd.f32 %v794_v22, %v612_v20  ;;  %v796_v27 = vpop.f32.mrb[25].mxu1  ;;  %v624_v22 = vld [vmem:[#allocation2 + $0x120] sm:$0xff] }
 0x2a9   : > { %v2379_v31 = vadd.f32 %v796_v27, %v613_v21  ;;  %v798_v32 = vpop.f32.mrb[26].mxu1  ;;  %v625_v27 = vld [vmem:[#allocation2 + $0x128] sm:$0xff] }
 0x2aa   : > { %v2381_v33 = vadd.f32 %v798_v32, %v614_v24  ;;  %v800_v34 = vpop.f32.mrb[27].mxu1  ;;  %v626_v32 = vld [vmem:[#allocation2 + $0x130] sm:$0xff] }
 0x2ab   : > { %v2383_v35 = vadd.f32 %v800_v34, %v615_v29  ;;  %v929_v36 = vmax.f32 %v2377_v25, %v2379_v31 }
 0x2ad   : > { %930 = vmax.xlane.f32.xlu1 %v929_v36  ;;  %v932_v38 = vmax.f32 %v2381_v33, %v2383_v35 }
 0x2af   : > { %933 = vmax.xlane.f32.xlu0 %v932_v38  ;;  %v804_v43 = vpop.f32.mrb[28].mxu1  ;;  %v627_v38 = vld [vmem:[#allocation2 + $0x138] sm:$0xff] }
 0x2b0   : > { %v2389_v46 = vadd.f32 %v804_v43, %v616_v39  ;;  %v806_v47 = vpop.f32.mrb[29].mxu1 }
 0x2b1   : > { %v2391_v49 = vadd.f32 %v806_v47, %v617_v41  ;;  %v808_v50 = vpop.f32.mrb[30].mxu1 }
 0x2b2   : > { %v2393_v52 = vadd.f32 %v808_v50, %v618_v45  ;;  %v810_v53 = vpop.f32.mrb[31].mxu1  ;;  %v628_v50 = vld [vmem:[#allocation2 + $0x140] sm:$0xff] }
 0x2b3   : > { %v2395_v55 = vadd.f32 %v810_v53, %v619_v48  ;;  %v935_v57 = vmax.f32 %v2389_v46, %v2391_v49 }
 0x2b5   : > { %936 = vmax.xlane.f32.xlu1 %v935_v57  ;;  %v938_v62 = vmax.f32 %v2393_v52, %v2395_v55  ;;  %v629_v57 = vld [vmem:[#allocation2 + $0x148] sm:$0xff] }
 0x2b7   : > { %v814_v3 = vpop.f32.mrb[32].mxu1  ;;  %939 = vmax.xlane.f32.xlu0 %v938_v62  ;;  %v630_v62 = vld [vmem:[#allocation2 + $0x150] sm:$0xff] }
 0x2b8   : > { %v2401_v5 = vadd.f32 %v814_v3, %v620_v60  ;;  %v816_v7 = vpop.f32.mrb[33].mxu1 }
 0x2b9   : > { %v2403_v11 = vadd.f32 %v816_v7, %v621_v1  ;;  %v818_v15 = vpop.f32.mrb[34].mxu1 }
 0x2ba   : > { %v2405_v18 = vadd.f32 %v818_v15, %v622_v4  ;;  %v820_v19 = vpop.f32.mrb[35].mxu1  ;;  %v631_v4 = vld [vmem:[#allocation2 + $0x158] sm:$0xff] }
 0x2bb   : > { %v2407_v20 = vadd.f32 %v820_v19, %v623_v8  ;;  %v941_v21 = vmax.f32 %v2401_v5, %v2403_v11 }
 0x2bd   : > { %942 = vmax.xlane.f32.xlu1 %v941_v21  ;;  %v944_v24 = vmax.f32 %v2405_v18, %v2407_v20 }
 0x2bf   : > { %v824_v29 = vpop.f32.mrb[36].mxu1  ;;  %945 = vmax.xlane.f32.xlu0 %v944_v24  ;;  %v632_v24 = vld [vmem:[#allocation2 + $0x160] sm:$0xff] }
 0x2c0   : > { %v2413_v34 = vadd.f32 %v824_v29, %v624_v22  ;;  %v826_v36 = vpop.f32.mrb[37].mxu1  ;;  %v633_v29 = vld [vmem:[#allocation2 + $0x168] sm:$0xff] }
 0x2c1   : > { %v2415_v39 = vadd.f32 %v826_v36, %v625_v27  ;;  %v828_v41 = vpop.f32.mrb[38].mxu1  ;;  %v634_v36 = vld [vmem:[#allocation2 + $0x170] sm:$0xff] }
 0x2c2   : > { %v2417_v43 = vadd.f32 %v828_v41, %v626_v32  ;;  %v830_v45 = vpop.f32.mrb[39].mxu1 }
 0x2c3   : > { %3045 = vst [vmem:[#allocation8_spill] sm:$0xff] %v2415_v39  ;;  %v2419_v47 = vadd.f32 %v830_v45, %v627_v38  ;;  %v947_v48 = vmax.f32 %v2413_v34, %v2415_v39  ;;  %v635_v45 = vld [vmem:[#allocation2 + $0x178] sm:$0xff] }
 0x2c4   : > { %3046 = vst [vmem:[#allocation9_spill] sm:$0xff] %v2417_v43 }
 0x2c5   : > { %3047 = vst [vmem:[#allocation10_spill] sm:$0xff] %v2419_v47  ;;  %948 = vmax.xlane.f32.xlu1 %v947_v48  ;;  %v950_v53 = vmax.f32 %v2417_v43, %v2419_v47 }
 0x2c7   : > { %v834_v60 = vpop.f32.mrb[40].mxu1  ;;  %951 = vmax.xlane.f32.xlu0 %v950_v53 }
 0x2c8   : > { %v2425_v1 = vadd.f32 %v834_v60, %v628_v50  ;;  %v836_v3 = vpop.f32.mrb[41].mxu1 }
 0x2c9   : > { %v2427_v7 = vadd.f32 %v836_v3, %v629_v57  ;;  %v838_v8 = vpop.f32.mrb[42].mxu1  ;;  %v636_v3 = vld [vmem:[#allocation2 + $0x180] sm:$0xff] }
 0x2ca   : > { %3048 = vst [vmem:[#allocation11_spill] sm:$0xff] %v2425_v1  ;;  %v2429_v15 = vadd.f32 %v838_v8, %v630_v62  ;;  %v840_v19 = vpop.f32.mrb[43].mxu1  ;;  %v637_v8 = vld [vmem:[#allocation2 + $0x188] sm:$0xff] }
 0x2cb   : > { %3049 = vst [vmem:[#allocation12_spill] sm:$0xff] %v2427_v7  ;;  %v2431_v21 = vadd.f32 %v840_v19, %v631_v4  ;;  %v953_v22 = vmax.f32 %v2425_v1, %v2427_v7 }
 0x2cc   : > { %3050 = vst [vmem:[#allocation13_spill] sm:$0xff] %v2429_v15 }
 0x2cd   : > { %3051 = vst [vmem:[#allocation14_spill] sm:$0xff] %v2431_v21  ;;  %954 = vmax.xlane.f32.xlu1 %v953_v22  ;;  %v956_v27 = vmax.f32 %v2429_v15, %v2431_v21 }
 0x2cf   : > { %v844_v32 = vpop.f32.mrb[44].mxu1  ;;  %957 = vmax.xlane.f32.xlu0 %v956_v27 }
 0x2d0   : > { %v2437_v38 = vadd.f32 %v844_v32, %v632_v24  ;;  %v846_v41 = vpop.f32.mrb[45].mxu1 }
 0x2d1   : > { %v2439_v48 = vadd.f32 %v846_v41, %v633_v29  ;;  %v848_v50 = vpop.f32.mrb[46].mxu1 }
 0x2d2   : > { %3052 = vst [vmem:[#allocation15_spill] sm:$0xff] %v2437_v38  ;;  %v2441_v53 = vadd.f32 %v848_v50, %v634_v36  ;;  %v850_v57 = vpop.f32.mrb[47].mxu1 }
 0x2d3   : > { %3053 = vst [vmem:[#allocation16_spill] sm:$0xff] %v2439_v48  ;;  %v2443_v60 = vadd.f32 %v850_v57, %v635_v45  ;;  %v959_v62 = vmax.f32 %v2437_v38, %v2439_v48 }
 0x2d4   : > { %3054 = vst [vmem:[#allocation17_spill] sm:$0xff] %v2441_v53 }
 0x2d5   : > { %3055 = vst [vmem:[#allocation18_spill] sm:$0xff] %v2443_v60  ;;  %960 = vmax.xlane.f32.xlu1 %v959_v62  ;;  %v962_v4 = vmax.f32 %v2441_v53, %v2443_v60 }
 0x2d7   : > { %v854_v19 = vpop.f32.mrb[48].mxu1  ;;  %963 = vmax.xlane.f32.xlu0 %v962_v4 }
 0x2d8   : > { %v2449_v22 = vadd.f32 %v854_v19, %v636_v3  ;;  %v856_v24 = vpop.f32.mrb[49].mxu1 }
 0x2d9   : > { %v2451_v27 = vadd.f32 %v856_v24, %v637_v8  ;;  %v2453_v29 = vpop.f32.mrb[50].mxu1 }
 0x2da   : > { %3056 = vst [vmem:[#allocation19_spill] sm:$0xff] %v2449_v22  ;;  %v2455_v32 = vpop.f32.mrb[51].mxu1 }
 0x2db   : > { %3057 = vst [vmem:[#allocation20_spill] sm:$0xff] %v2451_v27  ;;  %v965_v36 = vmax.f32 %v2449_v22, %v2451_v27  ;;  %v1785_v27 = vld [vmem:[%s3001_s1 + $0x20] sm:$0xff]   ;;  %v3058_v22 = vmov 0  }
 0x2dc   : > { %1694 = vmatmul.mubr.msk.bf16.gmra.mrb[16].mxu0 %vm392_vm0, %v1785_v27 }
 0x2dd   : > { %966 = vmax.xlane.f32.xlu1 %v965_v36  ;;  %493 = vmatprep.mubr.bf16.mxu0 %v3058_v22 }
 0x2df   : > { %v864_v41 = vpop.f32.mrb[52].mxu1 }
 0x2e0   : > { %v866_v45 = vpop.f32.mrb[53].mxu1 }
 0x2e1   : > { %v2459_v50 = vpop.f32.mrb[54].mxu1 }
 0x2e2   : > { %v2461_v57 = vpop.f32.mrb[55].mxu1 }
 0x2e7   : > { %v2463_v62 = vpop.f32.mrb[56].mxu1 }
 0x2e8   : > { %v2465_v3 = vpop.f32.mrb[57].mxu1 }
 0x2e9   : > { %v2467_v4 = vpop.f32.mrb[58].mxu1 }
 0x2ea   : > { %v2469_v8 = vpop.f32.mrb[59].mxu1 }
 0x2ef   : > { %v2471_v19 = vpop.f32.mrb[60].mxu1 }
 0x2f0   : > { %v2473_v24 = vpop.f32.mrb[61].mxu1 }
 0x2f1   : > { %v2475_v0 = vpop.f32.mrb[62].mxu1 }
 0x2f2   : > { %v2477_v36 = vpop.f32.mrb[63].mxu1 }
 0x30a   : > { %v895_v60 = vpop.xlane.xlu0 %894 }
 0x30b   : > { %v989_v53 = vsub.f32 %v2305_v58, %v895_v60  ;;  %v990_v48 = vsub.f32 %v2307_v61, %v895_v60 }
 0x30c   : > { %v898_v38 = vpop.xlane.xlu1 %897 }
 0x30d   : > { %v1053_v21 = vmul.f32 1.442695, %v989_v53  ;;  %v1055_v15 = vmul.f32 1.442695, %v990_v48  ;;  %v991_v7 = vsub.f32 %v2309_v63, %v898_v38  ;;  %v992_v1 = vsub.f32 %v2311_v2, %v898_v38  ;;  %v640_v48 = vld [vmem:[#allocation2 + $0x1a0] sm:$0xff]  ;;  %v641_v53 = vld [vmem:[#allocation2 + $0x1a8] sm:$0xff] }
 0x30e   : > { %v639_v38 = vld [vmem:[#allocation2 + $0x198] sm:$0xff] }
 0x30f   : > { %1789 = vpow2.f32 %v1053_v21  ;;  %v1057_v47 = vmul.f32 1.442695, %v991_v7  ;;  %v1059_v43 = vmul.f32 1.442695, %v992_v1 }
 0x310   : > { %1791 = vpow2.f32 %v1055_v15 }
 0x311   : > { %1793 = vpow2.f32 %v1057_v47 }
 0x312   : > { %1795 = vpow2.f32 %v1059_v43  ;;  %v901_v27 = vpop.xlane.xlu0 %900 }
 0x313   : > { %v993_v22 = vsub.f32 %v2317_v9, %v901_v27  ;;  %v994_v58 = vsub.f32 %v2319_v12, %v901_v27  ;;  %v2496_v9 = vadd.f32 %v864_v41, %v640_v48  ;;  %v2498_v12 = vadd.f32 %v866_v45, %v641_v53  ;;  %v644_v48 = vld [vmem:[#allocation2 + $0x1c0] sm:$0xff]  ;;  %v645_v53 = vld [vmem:[#allocation2 + $0x1c8] sm:$0xff] }
 0x315   : > { %v1061_v39 = vmul.f32 1.442695, %v993_v22  ;;  %v1063_v61 = vmul.f32 1.442695, %v994_v58 }
 0x316   : > { %v904_v60 = vpop.xlane.xlu0 %903 }
 0x317   : > { %1797 = vpow2.f32 %v1061_v39  ;;  %v995_v63 = vsub.f32 %v2321_v14, %v904_v60  ;;  %v996_v2 = vsub.f32 %v2323_v16, %v904_v60  ;;  %v638_v39 = vld [vmem:[#allocation2 + $0x190] sm:$0xff] }
 0x318   : > { %1799 = vpow2.f32 %v1063_v61 }
 0x319   : > { %v2492_v1 = vpop.eup %1789  ;;  %v1065_v47 = vmul.f32 1.442695, %v995_v63  ;;  %v1067_v43 = vmul.f32 1.442695, %v996_v2 }
 0x31a   : > { %v2494_v7 = vpop.eup %1791  ;;  %v907_v15 = vpop.xlane.xlu1 %906 }
 0x31b   : > { %v2500_v21 = vpop.eup %1793  ;;  %1801 = vpow2.f32 %v1065_v47  ;;  %v997_v14 = vsub.f32 %v2329_v23, %v907_v15  ;;  %v998_v16 = vsub.f32 %v2331_v26, %v907_v15  ;;  %v1181_v22 = vadd.f32 %v2494_v7, %v2492_v1 }
 0x31c   : > { %v2506_v27 = vpop.eup %1795  ;;  %1803 = vpow2.f32 %v1067_v43  ;;  %v910_v41 = vpop.xlane.xlu0 %909  ;;  %v2511_v23 = vadd.f32 %v2453_v29, %v638_v39  ;;  %v2514_v26 = vadd.f32 %v2455_v32, %v639_v38  ;;  %v971_v43 = vmax.f32 %v2496_v9, %v2498_v12  ;;  %v642_v38 = vld [vmem:[#allocation2 + $0x1b0] sm:$0xff] }
 0x31d   : > { %v1069_v58 = vmul.f32 1.442695, %v997_v14  ;;  %v1071_v45 = vmul.f32 1.442695, %v998_v16  ;;  %1182 = vadd.xlane.f32.xlu1 %v1181_v22  ;;  %v999_v61 = vsub.f32 %v2333_v28, %v910_v41  ;;  %v1000_v60 = vsub.f32 %v2335_v30, %v910_v41  ;;  %v643_v14 = vld [vmem:[#allocation2 + $0x1b8] sm:$0xff] }
 0x31e   : > { %v1184_v63 = vadd.f32 %v2506_v27, %v2500_v21  ;;  %v2521_v28 = vadd.f32 %v2463_v62, %v644_v48  ;;  %v2524_v30 = vadd.f32 %v2465_v3, %v645_v53  ;;  %v968_v39 = vmax.f32 %v2511_v23, %v2514_v26  ;;  %v649_v53 = vld [vmem:[#allocation2 + $0x1e8] sm:$0xff] }
 0x31f   : > { %1805 = vpow2.f32 %v1069_v58  ;;  %v1073_v2 = vmul.f32 1.442695, %v999_v61  ;;  %v1075_v47 = vmul.f32 1.442695, %v1000_v60 }
 0x320   : > { %1807 = vpow2.f32 %v1071_v45  ;;  %1185 = vadd.xlane.f32.xlu0 %v1184_v63  ;;  %v977_v41 = vmax.f32 %v2521_v28, %v2524_v30  ;;  %v2545_v63 = vadd.f32 %v2459_v50, %v642_v38  ;;  %v646_v50 = vld [vmem:[#allocation2 + $0x1d0] sm:$0xff] }
 0x321   : > { %v2526_v29 = vpop.eup %1797  ;;  %1809 = vpow2.f32 %v1073_v2  ;;  %972 = vmax.xlane.f32.xlu1 %v971_v43  ;;  %v2548_v2 = vadd.f32 %v2461_v57, %v643_v14  ;;  %v647_v57 = vld [vmem:[#allocation2 + $0x1d8] sm:$0xff] }
 0x322   : > { %v2528_v32 = vpop.eup %1799  ;;  %1811 = vpow2.f32 %v1075_v47  ;;  %v913_v15 = vpop.xlane.xlu1 %912 }
 0x323   : > { %v1001_v16 = vsub.f32 %v2341_v37, %v913_v15  ;;  %v1002_v62 = vsub.f32 %v2343_v40, %v913_v15  ;;  %v1187_v3 = vadd.f32 %v2528_v32, %v2526_v29  ;;  %v648_v37 = vld [vmem:[#allocation2 + $0x1e0] sm:$0xff] }
 0x324   : > { %969 = vmax.xlane.f32.xlu0 %v968_v39  ;;  %v916_v22 = vpop.xlane.xlu0 %915 }
 0x325   : > { %v2538_v58 = vpop.eup %1801  ;;  %v1077_v45 = vmul.f32 1.442695, %v1001_v16  ;;  %v1079_v61 = vmul.f32 1.442695, %v1002_v62  ;;  %1188 = vadd.xlane.f32.xlu1 %v1187_v3  ;;  %v1003_v60 = vsub.f32 %v2345_v42, %v916_v22  ;;  %v1004_v48 = vsub.f32 %v2347_v44, %v916_v22 }
 0x326   : > { %v2542_v40 = vpop.eup %1803  ;;  %v2553_v42 = vadd.f32 %v2471_v19, %v648_v37  ;;  %v2556_v44 = vadd.f32 %v2473_v24, %v649_v53  ;;  %v974_v3 = vmax.f32 %v2545_v63, %v2548_v2 }
 0x327   : > { %1813 = vpow2.f32 %v1077_v45  ;;  %v1081_v47 = vmul.f32 1.442695, %v1003_v60  ;;  %v1083_v43 = vmul.f32 1.442695, %v1004_v48  ;;  %v1190_v15 = vadd.f32 %v2542_v40, %v2538_v58 }
 0x328   : > { %1815 = vpow2.f32 %v1079_v61  ;;  %v2576_v45 = vadd.f32 %v2469_v8, %v647_v57 }
 0x329   : > { %v2558_v39 = vpop.eup %1805  ;;  %1817 = vpow2.f32 %v1081_v47  ;;  %978 = vmax.xlane.f32.xlu1 %v977_v41  ;;  %1191 = vadd.xlane.f32.xlu0 %v1190_v15  ;;  %v2573_v41 = vadd.f32 %v2467_v4, %v646_v50  ;;  %v650_v15 = vld [vmem:[#allocation2 + $0x1f0] sm:$0xff]  ;;  %v651_v50 = vld [vmem:[#allocation2 + $0x1f8] sm:$0xff] }
 0x32a   : > { %v2560_v38 = vpop.eup %1807  ;;  %1819 = vpow2.f32 %v1083_v43  ;;  %v919_v14 = vpop.xlane.xlu1 %918 }
 0x32b   : > { %v2562_v16 = vpop.eup %1809  ;;  %v1005_v62 = vsub.f32 %v2353_v51, %v919_v14  ;;  %v1006_v19 = vsub.f32 %v2355_v54, %v919_v14  ;;  %v1193_v24 = vadd.f32 %v2560_v38, %v2558_v39  ;;  %v983_v51 = vmax.f32 %v2553_v42, %v2556_v44 }
 0x32c   : > { %v2570_v22 = vpop.eup %1811  ;;  %v922_v61 = vpop.xlane.xlu0 %921  ;;  %v980_v43 = vmax.f32 %v2573_v41, %v2576_v45 }
 0x32d   : > { %v1085_v60 = vmul.f32 1.442695, %v1005_v62  ;;  %v1087_v54 = vmul.f32 1.442695, %v1006_v19  ;;  %1194 = vadd.xlane.f32.xlu1 %v1193_v24  ;;  %975 = vmax.xlane.f32.xlu0 %v974_v3  ;;  %v1007_v48 = vsub.f32 %v2357_v56, %v922_v61  ;;  %v1008_v37 = vsub.f32 %v2359_v59, %v922_v61 }
 0x32e   : > { %v1196_v4 = vadd.f32 %v2570_v22, %v2562_v16  ;;  %v2599_v61 = vadd.f32 %v2475_v0, %v650_v15 }
 0x32f   : > { %1821 = vpow2.f32 %v1085_v60  ;;  %v1089_v53 = vmul.f32 1.442695, %v1007_v48  ;;  %v1091_v47 = vmul.f32 1.442695, %v1008_v37  ;;  %v1786_v48 = vld [vmem:[%s3001_s1 + $0x28] sm:$0xff]  }
 0x330   : > { %1823 = vpow2.f32 %v1087_v54  ;;  %1695 = vmatmul.mubr.msk.bf16.gmra.mrb[20].mxu0 %vm392_vm0, %v1786_v48 }
 0x331   : > { %v2584_v8 = vpop.eup %1813  ;;  %1825 = vpow2.f32 %v1089_v53  ;;  %984 = vmax.xlane.f32.xlu1 %v983_v51  ;;  %1197 = vadd.xlane.f32.xlu0 %v1196_v4  ;;  %v2602_v51 = vadd.f32 %v2477_v36, %v651_v50 }
 0x332   : > { %v2588_v56 = vpop.eup %1815  ;;  %1827 = vpow2.f32 %v1091_v47  ;;  %v925_v59 = vpop.xlane.xlu1 %924 }
 0x333   : > { %v2590_v57 = vpop.eup %1817  ;;  %v1009_v14 = vsub.f32 %v2365_v6, %v925_v59  ;;  %v1010_v62 = vsub.f32 %v2367_v10, %v925_v59  ;;  %v1199_v19 = vadd.f32 %v2588_v56, %v2584_v8 }
 0x334   : > { %v2596_v24 = vpop.eup %1819  ;;  %v928_v3 = vpop.xlane.xlu0 %927 }
 0x335   : > { %v1093_v60 = vmul.f32 1.442695, %v1009_v14  ;;  %v1095_v54 = vmul.f32 1.442695, %v1010_v62  ;;  %1200 = vadd.xlane.f32.xlu1 %v1199_v19  ;;  %981 = vmax.xlane.f32.xlu0 %v980_v43  ;;  %v1011_v6 = vsub.f32 %v2369_v13, %v928_v3  ;;  %v1012_v10 = vsub.f32 %v2371_v17, %v928_v3 }
 0x336   : > { %v1202_v0 = vadd.f32 %v2596_v24, %v2590_v57  ;;  %v986_v13 = vmax.f32 %v2599_v61, %v2602_v51 }
 0x337   : > { %1829 = vpow2.f32 %v1093_v60  ;;  %v1097_v37 = vmul.f32 1.442695, %v1011_v6  ;;  %v1099_v53 = vmul.f32 1.442695, %v1012_v10 }
 0x338   : > { %1831 = vpow2.f32 %v1095_v54 }
 0x339   : > { %v2612_v36 = vpop.eup %1821  ;;  %1833 = vpow2.f32 %v1097_v37  ;;  %1203 = vadd.xlane.f32.xlu0 %v1202_v0 }
 0x33a   : > { %v2616_v17 = vpop.eup %1823  ;;  %1835 = vpow2.f32 %v1099_v53  ;;  %v931_v47 = vpop.xlane.xlu1 %930 }
 0x33b   : > { %v2618_v4 = vpop.eup %1825  ;;  %v1013_v43 = vsub.f32 %v2377_v25, %v931_v47  ;;  %v1014_v15 = vsub.f32 %v2379_v31, %v931_v47  ;;  %v1205_v50 = vadd.f32 %v2616_v17, %v2612_v36 }
 0x33c   : > { %v2624_v59 = vpop.eup %1827  ;;  %v934_v14 = vpop.xlane.xlu0 %933 }
 0x33d   : > { %v1101_v62 = vmul.f32 1.442695, %v1013_v43  ;;  %v1103_v19 = vmul.f32 1.442695, %v1014_v15  ;;  %1206 = vadd.xlane.f32.xlu1 %v1205_v50  ;;  %987 = vmax.xlane.f32.xlu0 %v986_v13  ;;  %v1015_v3 = vsub.f32 %v2381_v33, %v934_v14  ;;  %v1016_v60 = vsub.f32 %v2383_v35, %v934_v14 }
 0x33e   : > { %v1208_v25 = vadd.f32 %v2624_v59, %v2618_v4 }
 0x33f   : > { %1837 = vpow2.f32 %v1101_v62  ;;  %v1105_v54 = vmul.f32 1.442695, %v1015_v3  ;;  %v1107_v6 = vmul.f32 1.442695, %v1016_v60 }
 0x340   : > { %1839 = vpow2.f32 %v1103_v19 }
 0x341   : > { %v2630_v31 = vpop.eup %1829  ;;  %1841 = vpow2.f32 %v1105_v54  ;;  %1209 = vadd.xlane.f32.xlu0 %v1208_v25 }
 0x342   : > { %v2632_v10 = vpop.eup %1831  ;;  %1843 = vpow2.f32 %v1107_v6  ;;  %v937_v48 = vpop.xlane.xlu1 %936 }
 0x343   : > { %v2634_v37 = vpop.eup %1833  ;;  %v1017_v33 = vsub.f32 %v2389_v46, %v937_v48  ;;  %v1018_v35 = vsub.f32 %v2391_v49, %v937_v48  ;;  %v1211_v53 = vadd.f32 %v2632_v10, %v2630_v31 }
 0x344   : > { %v2640_v0 = vpop.eup %1835  ;;  %v940_v13 = vpop.xlane.xlu0 %939 }
 0x345   : > { %v1109_v47 = vmul.f32 1.442695, %v1017_v33  ;;  %v1111_v43 = vmul.f32 1.442695, %v1018_v35  ;;  %1212 = vadd.xlane.f32.xlu1 %v1211_v53  ;;  %v1019_v15 = vsub.f32 %v2393_v52, %v940_v13  ;;  %v1020_v50 = vsub.f32 %v2395_v55, %v940_v13 }
 0x346   : > { %v1214_v14 = vadd.f32 %v2640_v0, %v2634_v37 }
 0x347   : > { %1845 = vpow2.f32 %v1109_v47  ;;  %v1113_v46 = vmul.f32 1.442695, %v1019_v15  ;;  %v1115_v62 = vmul.f32 1.442695, %v1020_v50 }
 0x348   : > { %1847 = vpow2.f32 %v1111_v43  ;;  %1215 = vadd.xlane.f32.xlu0 %v1214_v14 }
 0x349   : > { %v2646_v49 = vpop.eup %1837  ;;  %1849 = vpow2.f32 %v1113_v46 }
 0x34a   : > { %v2648_v19 = vpop.eup %1839  ;;  %1851 = vpow2.f32 %v1115_v62  ;;  %v943_v3 = vpop.xlane.xlu1 %942 }
 0x34b   : > { %v2650_v60 = vpop.eup %1841  ;;  %v1021_v52 = vsub.f32 %v2401_v5, %v943_v3  ;;  %v1022_v55 = vsub.f32 %v2403_v11, %v943_v3  ;;  %v1217_v54 = vadd.f32 %v2648_v19, %v2646_v49 }
 0x34c   : > { %v2656_v6 = vpop.eup %1843  ;;  %v946_v25 = vpop.xlane.xlu0 %945 }
 0x34d   : > { %v1117_v48 = vmul.f32 1.442695, %v1021_v52  ;;  %v1119_v33 = vmul.f32 1.442695, %v1022_v55  ;;  %1218 = vadd.xlane.f32.xlu1 %v1217_v54  ;;  %v1023_v35 = vsub.f32 %v2405_v18, %v946_v25  ;;  %v1024_v53 = vsub.f32 %v2407_v20, %v946_v25  ;;  %v3060_v20 = vld [vmem:[#allocation8_spill] sm:$0xff]  ;;  %v3061_v54 = vld [vmem:[#allocation9_spill] sm:$0xff] }
 0x34e   : > { %v1220_v13 = vadd.f32 %v2656_v6, %v2650_v60 }
 0x34f   : > { %1853 = vpow2.f32 %v1117_v48  ;;  %v1121_v5 = vmul.f32 1.442695, %v1023_v35  ;;  %v1123_v47 = vmul.f32 1.442695, %v1024_v53  ;;  %v3062_v48 = vld [vmem:[#allocation10_spill] sm:$0xff] }
 0x350   : > { %1855 = vpow2.f32 %v1119_v33  ;;  %1221 = vadd.xlane.f32.xlu0 %v1220_v13 }
 0x351   : > { %v2662_v11 = vpop.eup %1845  ;;  %1857 = vpow2.f32 %v1121_v5 }
 0x352   : > { %3059 = vst [vmem:[#allocation21_spill] sm:$0xff] %v2662_v11  ;;  %v2664_v43 = vpop.eup %1847  ;;  %1859 = vpow2.f32 %v1123_v47  ;;  %v949_v15 = vpop.xlane.xlu1 %948 }
 0x353   : > { %v2666_v50 = vpop.eup %1849  ;;  %v1025_v18 = vsub.f32 %v2413_v34, %v949_v15  ;;  %v1026_v14 = vsub.f32 %v3060_v20, %v949_v15  ;;  %v1223_v46 = vadd.f32 %v2664_v43, %v2662_v11 }
 0x354   : > { %v2672_v62 = vpop.eup %1851  ;;  %v952_v3 = vpop.xlane.xlu0 %951 }
 0x355   : > { %v1125_v52 = vmul.f32 1.442695, %v1025_v18  ;;  %v1127_v55 = vmul.f32 1.442695, %v1026_v14  ;;  %1224 = vadd.xlane.f32.xlu1 %v1223_v46  ;;  %v1027_v25 = vsub.f32 %v3061_v54, %v952_v3  ;;  %v1028_v33 = vsub.f32 %v3062_v48, %v952_v3  ;;  %v3066_v18 = vld [vmem:[#allocation11_spill] sm:$0xff]  ;;  %v3067_v14 = vld [vmem:[#allocation12_spill] sm:$0xff] }
 0x356   : > { %v1226_v35 = vadd.f32 %v2672_v62, %v2666_v50  ;;  %v3069_v48 = vld [vmem:[#allocation13_spill] sm:$0xff] }
 0x357   : > { %1861 = vpow2.f32 %v1125_v52  ;;  %v1129_v34 = vmul.f32 1.442695, %v1027_v25  ;;  %v1131_v53 = vmul.f32 1.442695, %v1028_v33 }
 0x358   : > { %1863 = vpow2.f32 %v1127_v55  ;;  %1227 = vadd.xlane.f32.xlu0 %v1226_v35  ;;  %v3070_v35 = vld [vmem:[#allocation14_spill] sm:$0xff] }
 0x359   : > { %v2678_v13 = vpop.eup %1853  ;;  %1865 = vpow2.f32 %v1129_v34 }
 0x35a   : > { %3063 = vst [vmem:[#allocation8_spill] sm:$0xff] %v2678_v13  ;;  %v2680_v5 = vpop.eup %1855  ;;  %1867 = vpow2.f32 %v1131_v53  ;;  %v955_v47 = vpop.xlane.xlu1 %954 }
 0x35b   : > { %3064 = vst [vmem:[#allocation9_spill] sm:$0xff] %v2680_v5  ;;  %v2682_v15 = vpop.eup %1857  ;;  %v1029_v20 = vsub.f32 %v3066_v18, %v955_v47  ;;  %v1030_v46 = vsub.f32 %v3067_v14, %v955_v47  ;;  %v1229_v3 = vadd.f32 %v2680_v5, %v2678_v13 }
 0x35c   : > { %3065 = vst [vmem:[#allocation10_spill] sm:$0xff] %v2682_v15  ;;  %v2688_v52 = vpop.eup %1859  ;;  %v958_v55 = vpop.xlane.xlu0 %957 }
 0x35d   : > { %3068 = vst [vmem:[#allocation11_spill] sm:$0xff] %v2688_v52  ;;  %v1133_v54 = vmul.f32 1.442695, %v1029_v20  ;;  %v1135_v25 = vmul.f32 1.442695, %v1030_v46  ;;  %1230 = vadd.xlane.f32.xlu1 %v1229_v3  ;;  %v1031_v33 = vsub.f32 %v3069_v48, %v958_v55  ;;  %v1032_v34 = vsub.f32 %v3070_v35, %v958_v55  ;;  %v3071_v3 = vld [vmem:[#allocation15_spill] sm:$0xff] }
 0x35e   : > { %v1232_v53 = vadd.f32 %v2688_v52, %v2682_v15  ;;  %v3072_v55 = vld [vmem:[#allocation16_spill] sm:$0xff]  ;;  %v3074_v15 = vld [vmem:[#allocation18_spill] sm:$0xff] }
 0x35f   : > { %1869 = vpow2.f32 %v1133_v54  ;;  %v1137_v18 = vmul.f32 1.442695, %v1031_v33  ;;  %v1139_v11 = vmul.f32 1.442695, %v1032_v34 }
 0x360   : > { %1871 = vpow2.f32 %v1135_v25  ;;  %1233 = vadd.xlane.f32.xlu0 %v1232_v53 }
 0x361   : > { %v2694_v47 = vpop.eup %1861  ;;  %1873 = vpow2.f32 %v1137_v18  ;;  %v3073_v18 = vld [vmem:[#allocation17_spill] sm:$0xff] }
 0x362   : > { %v2696_v14 = vpop.eup %1863  ;;  %1875 = vpow2.f32 %v1139_v11  ;;  %v961_v20 = vpop.xlane.xlu1 %960 }
 0x363   : > { %v2698_v46 = vpop.eup %1865  ;;  %v1033_v48 = vsub.f32 %v3071_v3, %v961_v20  ;;  %v1034_v35 = vsub.f32 %v3072_v55, %v961_v20  ;;  %v1235_v54 = vadd.f32 %v2696_v14, %v2694_v47 }
 0x364   : > { %v2704_v33 = vpop.eup %1867  ;;  %v964_v25 = vpop.xlane.xlu0 %963 }
 0x365   : > { %v1141_v34 = vmul.f32 1.442695, %v1033_v48  ;;  %v1143_v53 = vmul.f32 1.442695, %v1034_v35  ;;  %1236 = vadd.xlane.f32.xlu1 %v1235_v54  ;;  %v1035_v13 = vsub.f32 %v3073_v18, %v964_v25  ;;  %v1036_v11 = vsub.f32 %v3074_v15, %v964_v25  ;;  %v3077_v54 = vld [vmem:[#allocation19_spill] sm:$0xff]  ;;  %v3078_v15 = vld [vmem:[#allocation20_spill] sm:$0xff] }
 0x366   : > { %v1238_v52 = vadd.f32 %v2704_v33, %v2698_v46 }
 0x367   : > { %1877 = vpow2.f32 %v1141_v34  ;;  %v1145_v3 = vmul.f32 1.442695, %v1035_v13  ;;  %v1147_v5 = vmul.f32 1.442695, %v1036_v11 }
 0x368   : > { %1879 = vpow2.f32 %v1143_v53  ;;  %1239 = vadd.xlane.f32.xlu0 %v1238_v52 }
 0x369   : > { %v2710_v20 = vpop.eup %1869  ;;  %1881 = vpow2.f32 %v1145_v3 }
 0x36a   : > { %3075 = vst [vmem:[#allocation12_spill] sm:$0xff] %v2710_v20  ;;  %v2712_v55 = vpop.eup %1871  ;;  %1883 = vpow2.f32 %v1147_v5  ;;  %v967_v48 = vpop.xlane.xlu1 %966 }
 0x36b   : > { %v2714_v35 = vpop.eup %1873  ;;  %v1037_v18 = vsub.f32 %v3077_v54, %v967_v48  ;;  %v1038_v25 = vsub.f32 %v3078_v15, %v967_v48  ;;  %v1241_v34 = vadd.f32 %v2712_v55, %v2710_v20 }
 0x36c   : > { %3076 = vst [vmem:[#allocation13_spill] sm:$0xff] %v2714_v35  ;;  %v2720_v13 = vpop.eup %1875 }
 0x36d   : > { %3079 = vst [vmem:[#allocation14_spill] sm:$0xff] %v2720_v13  ;;  %v1149_v53 = vmul.f32 1.442695, %v1037_v18  ;;  %v1151_v52 = vmul.f32 1.442695, %v1038_v25  ;;  %1242 = vadd.xlane.f32.xlu1 %v1241_v34  ;;  %v1244_v11 = vadd.f32 %v2720_v13, %v2714_v35 }
 0x36f   : > { %1885 = vpow2.f32 %v1149_v53  ;;  %1245 = vadd.xlane.f32.xlu0 %v1244_v11 }
 0x370   : > { %1887 = vpow2.f32 %v1151_v52 }
 0x371   : > { %v2724_v5 = vpop.eup %1877 }
 0x372   : > { %3080 = vst [vmem:[#allocation15_spill] sm:$0xff] %v2724_v5  ;;  %v2726_v3 = vpop.eup %1879 }
 0x373   : > { %3081 = vst [vmem:[#allocation16_spill] sm:$0xff] %v2726_v3  ;;  %v2728_v54 = vpop.eup %1881  ;;  %v1247_v48 = vadd.f32 %v2726_v3, %v2724_v5 }
 0x374   : > { %3082 = vst [vmem:[#allocation17_spill] sm:$0xff] %v2728_v54  ;;  %v2732_v15 = vpop.eup %1883 }
 0x375   : > { %3083 = vst [vmem:[#allocation18_spill] sm:$0xff] %v2732_v15  ;;  %1248 = vadd.xlane.f32.xlu1 %v1247_v48  ;;  %v1250_v18 = vadd.f32 %v2732_v15, %v2728_v54 }
 0x377   : > { %1251 = vadd.xlane.f32.xlu0 %v1250_v18 }
 0x379   : > { %v2736_v25 = vpop.eup %1885 }
 0x37a   : > { %3084 = vst [vmem:[#allocation19_spill] sm:$0xff] %v2736_v25  ;;  %v2738_v34 = vpop.eup %1887 }
 0x37b   : > { %v1253_v53 = vadd.f32 %v2738_v34, %v2736_v25 }
 0x37d   : > { %1254 = vadd.xlane.f32.xlu1 %v1253_v53 }
 0x3aa   : > { %v1183_v52 = vpop.xlane.xlu1 %1182 }
 0x3ab   : > { %1889 = vrcp.f32 %v1183_v52 }
 0x3ad   : > { %v1186_v11 = vpop.xlane.xlu0 %1185 }
 0x3ae   : > { %1891 = vrcp.f32 %v1186_v11  ;;  %v973_v5 = vpop.xlane.xlu1 %972 }
 0x3af   : > { %v1041_v3 = vsub.f32 %v2496_v9, %v973_v5  ;;  %v1042_v48 = vsub.f32 %v2498_v12, %v973_v5 }
 0x3b1   : > { %v1157_v20 = vmul.f32 1.442695, %v1041_v3  ;;  %v1159_v54 = vmul.f32 1.442695, %v1042_v48  ;;  %v970_v18 = vpop.xlane.xlu0 %969 }
 0x3b2   : > { %v1039_v15 = vsub.f32 %v2511_v23, %v970_v18  ;;  %v1040_v35 = vsub.f32 %v2514_v26, %v970_v18  ;;  %v1189_v13 = vpop.xlane.xlu1 %1188 }
 0x3b3   : > { %1893 = vpow2.f32 %v1157_v20 }
 0x3b4   : > { %1895 = vpow2.f32 %v1159_v54  ;;  %v1153_v53 = vmul.f32 1.442695, %v1039_v15  ;;  %v1155_v25 = vmul.f32 1.442695, %v1040_v35 }
 0x3b5   : > { %1897 = vrcp.f32 %v1189_v13  ;;  %v1890_v52 = vpop.eup %1889 }
 0x3b6   : > { %1899 = vpow2.f32 %v1153_v53  ;;  %v2746_v11 = vpop.xlane.xlu1 %978  ;;  %v1192_v9 = vpop.xlane.xlu0 %1191  ;;  %v1310_v5 = vmul.f32 %v1890_v52, %v2494_v7  ;;  %v1309_v54 = vmul.f32 %v1890_v52, %v2492_v1 }
 0x3b7   : > { %1901 = vpow2.f32 %v1155_v25 }
 0x3b8   : > { %v1892_v12 = vpop.eup %1891  ;;  %1903 = vrcp.f32 %v1192_v9 }
 0x3b9   : > { %v1312_v23 = vmul.f32 %v1892_v12, %v2506_v27  ;;  %v1311_v26 = vmul.f32 %v1892_v12, %v2500_v21 }
 0x3ba   : > { %v1195_v3 = vpop.xlane.xlu1 %1194  ;;  %v976_v20 = vpop.xlane.xlu0 %975 }
 0x3bb   : > { %v1043_v35 = vsub.f32 %v2545_v63, %v976_v20  ;;  %v1044_v13 = vsub.f32 %v2548_v2, %v976_v20  ;;  %v1378_v15 = vpack.c.bf16 %v1312_v23, %v1310_v5  ;;  %v1377_v48 = vpack.c.bf16 %v1311_v26, %v1309_v54 }
 0x3bc   : > { %1905 = vrcp.f32 %v1195_v3 }
 0x3bd   : > { %v2754_v18 = vpop.eup %1893  ;;  %v1161_v25 = vmul.f32 1.442695, %v1043_v35  ;;  %v1163_v53 = vmul.f32 1.442695, %v1044_v13  ;;  %1409 = vmatprep.subr.bf16.mxu0 %v1378_v15 }
 0x3be   : > { %v2756_v7 = vpop.eup %1895  ;;  %1410 = vmatpush1.bf16.xpose.msra.mxu0 %v1377_v48  ;;  %v2758_v21 = vpop.xlane.xlu1 %984 }
 0x3bf   : > { %v1198_v27 = vpop.xlane.xlu0 %1197  ;;  %v1898_v9 = vpop.eup %1897  ;;  %1907 = vpow2.f32 %v1161_v25  ;;  %v1259_v1 = vadd.f32 %v2756_v7, %v2754_v18 }
 0x3c0   : > { %v2762_v63 = vpop.eup %1899  ;;  %1909 = vpow2.f32 %v1163_v53  ;;  %v1314_v20 = vmul.f32 %v1898_v9, %v2528_v32  ;;  %v1313_v35 = vmul.f32 %v1898_v9, %v2526_v29 }
 0x3c1   : > { %v2764_v2 = vpop.eup %1901  ;;  %1911 = vrcp.f32 %v1198_v27  ;;  %1260 = vadd.xlane.f32.xlu1 %v1259_v1 }
 0x3c2   : > { %v1904_v52 = vpop.eup %1903  ;;  %v1256_v12 = vadd.f32 %v2764_v2, %v2762_v63  ;;  %v1201_v23 = vpop.xlane.xlu1 %1200 }
 0x3c3   : > { %v982_v5 = vpop.xlane.xlu0 %981  ;;  %v1316_v54 = vmul.f32 %v1904_v52, %v2542_v40  ;;  %v1315_v13 = vmul.f32 %v1904_v52, %v2538_v58  ;;  %1913 = vrcp.f32 %v1201_v23 }
 0x3c4   : > { %v1047_v26 = vsub.f32 %v2573_v41, %v982_v5  ;;  %v1048_v3 = vsub.f32 %v2576_v45, %v982_v5  ;;  %1257 = vadd.xlane.f32.xlu0 %v1256_v12 }
 0x3c5   : > { %v1380_v25 = vpack.c.bf16 %v1316_v54, %v1314_v20  ;;  %v1379_v27 = vpack.c.bf16 %v1315_v13, %v1313_v35 }
 0x3c6   : > { %v1169_v15 = vmul.f32 1.442695, %v1047_v26  ;;  %v1171_v48 = vmul.f32 1.442695, %v1048_v3  ;;  %v1906_v41 = vpop.eup %1905 }
 0x3c7   : > { %v1204_v53 = vpop.xlane.xlu0 %1203  ;;  %1411 = vmatprep.subr.bf16.mxu0 %v1380_v25  ;;  %v1318_v12 = vmul.f32 %v1906_v41, %v2560_v38  ;;  %v1317_v23 = vmul.f32 %v1906_v41, %v2558_v39 }
 0x3c8   : > { %1915 = vpow2.f32 %v1169_v15  ;;  %1412 = vmatpush1.bf16.xpose.msra.mxu0 %v1379_v27 }
 0x3c9   : > { %1917 = vpow2.f32 %v1171_v48  ;;  %v2774_v45 = vpop.eup %1907 }
 0x3ca   : > { %1919 = vrcp.f32 %v1204_v53  ;;  %v2776_v32 = vpop.eup %1909  ;;  %v1207_v9 = vpop.xlane.xlu1 %1206 }
 0x3cb   : > { %v988_v40 = vpop.xlane.xlu0 %987  ;;  %v1912_v29 = vpop.eup %1911  ;;  %v1262_v52 = vadd.f32 %v2776_v32, %v2774_v45  ;;  %1921 = vrcp.f32 %v1207_v9 }
 0x3cc   : > { %v1051_v58 = vsub.f32 %v2599_v61, %v988_v40  ;;  %v1052_v1 = vsub.f32 %v2602_v51, %v988_v40  ;;  %v1320_v5 = vmul.f32 %v1912_v29, %v2570_v22  ;;  %v1319_v26 = vmul.f32 %v1912_v29, %v2562_v16  ;;  %v298_v51 = vld [vmem:[%s3002_s2 + $0x40] sm:$0xff]  ;;  %v2793_v22 = vpop.f32.mrb[16].mxu0 }
 0x3cd   : > { %1263 = vadd.xlane.f32.xlu0 %v1262_v52  ;;  %v1914_v13 = vpop.eup %1913  ;;  %v2798_v53 = vpop.f32.mrb[17].mxu0 }
 0x3ce   : > { %v1177_v3 = vmul.f32 1.442695, %v1051_v58  ;;  %v1179_v20 = vmul.f32 1.442695, %v1052_v1  ;;  %v1382_v54 = vpack.c.bf16 %v1320_v5, %v1318_v12  ;;  %v1381_v61 = vpack.c.bf16 %v1319_v26, %v1317_v23 }
 0x3cf   : > { %v1210_v35 = vpop.xlane.xlu0 %1209  ;;  %v1322_v25 = vmul.f32 %v1914_v13, %v2588_v56  ;;  %v1321_v41 = vmul.f32 %v1914_v13, %v2584_v8 }
 0x3d0   : > { %1923 = vpow2.f32 %v1177_v3  ;;  %1413 = vmatprep.subr.bf16.mxu0 %v1382_v54  ;;  %v1045_v3 = vsub.f32 %v2521_v28, %v2746_v11  ;;  %v1049_v28 = vsub.f32 %v2553_v42, %v2758_v21 }
 0x3d1   : > { %1925 = vpow2.f32 %v1179_v20  ;;  %1414 = vmatpush1.bf16.xpose.msra.mxu0 %v1381_v61 }
 0x3d2   : > { %v2789_v38 = vpop.eup %1915  ;;  %1927 = vrcp.f32 %v1210_v35  ;;  %344 = vperm.xlu1 %1780, %v298_v51   ;;  %v1213_v16 = vpop.xlane.xlu1 %1212  ;;  %v1046_v51 = vsub.f32 %v2524_v30, %v2746_v11  ;;  %v1165_v13 = vmul.f32 1.442695, %v1045_v3 }
 0x3d3   : > { %v2791_v39 = vpop.eup %1917  ;;  %1929 = vrcp.f32 %v1213_v16 }
 0x3d4   : > { %v1920_v15 = vpop.eup %1919  ;;  %v1268_v48 = vadd.f32 %v2791_v39, %v2789_v38  ;;  %v1167_v16 = vmul.f32 1.442695, %v1046_v51 }
 0x3d5   : > { %v1324_v27 = vmul.f32 %v1920_v15, %v2596_v24  ;;  %v1323_v40 = vmul.f32 %v1920_v15, %v2590_v57  ;;  %v1216_v29 = vpop.xlane.xlu0 %1215  ;;  %v1922_v1 = vpop.eup %1921  ;;  %v1050_v15 = vsub.f32 %v2556_v44, %v2758_v21 }
 0x3d6   : > { %1269 = vadd.xlane.f32.xlu0 %v1268_v48  ;;  %1931 = vrcp.f32 %v1216_v29  ;;  %v1326_v8 = vmul.f32 %v1922_v1, %v2616_v17  ;;  %v1325_v23 = vmul.f32 %v1922_v1, %v2612_v36 }
 0x3d7   : > { %v1384_v9 = vpack.c.bf16 %v1324_v27, %v1322_v25  ;;  %v1383_v58 = vpack.c.bf16 %v1323_v40, %v1321_v41  ;;  %v1173_v27 = vmul.f32 1.442695, %v1049_v28 }
 0x3d9   : > { %1415 = vmatprep.subr.bf16.mxu0 %v1384_v9  ;;  %v2828_v9 = vpop.f32.mrb[18].mxu0 }
 0x3da   : > { %v2803_v52 = vpop.eup %1923  ;;  %1416 = vmatpush1.bf16.xpose.msra.mxu0 %v1383_v58  ;;  %v1219_v12 = vpop.xlane.xlu1 %1218 }
 0x3db   : > { %v2805_v56 = vpop.eup %1925  ;;  %1933 = vrcp.f32 %v1219_v12 }
 0x3dc   : > { %v1928_v5 = vpop.eup %1927  ;;  %v1274_v24 = vadd.f32 %v2805_v56, %v2803_v52 }
 0x3dd   : > { %v1328_v57 = vmul.f32 %v1928_v5, %v2624_v59  ;;  %v1327_v26 = vmul.f32 %v1928_v5, %v2618_v4  ;;  %v1222_v20 = vpop.xlane.xlu0 %1221  ;;  %v1930_v54 = vpop.eup %1929 }
 0x3de   : > { %1275 = vadd.xlane.f32.xlu0 %v1274_v24  ;;  %1935 = vrcp.f32 %v1222_v20  ;;  %v1330_v36 = vmul.f32 %v1930_v54, %v2632_v10  ;;  %v1329_v11 = vmul.f32 %v1930_v54, %v2630_v31  ;;  %v2830_v31 = vpop.f32.mrb[19].mxu0  ;;  %v299_v24 = vld [vmem:[%s3002_s2 + $0x48] sm:$0xff]  ;;  %v1547_v54 = vld [vmem:[%s3004_s4] sm:$0xff] }
 0x3df   : > { %v1386_v35 = vpack.c.bf16 %v1328_v57, %v1326_v8  ;;  %v1385_v61 = vpack.c.bf16 %v1327_v26, %v1325_v23 }
 0x3e0   : > { %v1932_v17 = vpop.eup %1931 }
 0x3e1   : > { %1417 = vmatprep.subr.bf16.mxu0 %v1386_v35  ;;  %v1332_v4 = vmul.f32 %v1932_v17, %v2640_v0  ;;  %v1331_v25 = vmul.f32 %v1932_v17, %v2634_v37  ;;  %v1175_v0 = vmul.f32 1.442695, %v1050_v15 }
 0x3e2   : > { %1418 = vmatpush1.bf16.xpose.msra.mxu0 %v1385_v61  ;;  %v1225_v59 = vpop.xlane.xlu1 %1224 }
 0x3e3   : > { %v1388_v48 = vpack.c.bf16 %v1332_v4, %v1330_v36  ;;  %1937 = vrcp.f32 %v1225_v59  ;;  %v1387_v42 = vpack.c.bf16 %v1331_v25, %v1329_v11  ;;  %v1549_v36 = vld [vmem:[%s3004_s4 + $0x10] sm:$0xff]  ;;  %v3086_v4 = vld [vmem:[#allocation9_spill] sm:$0xff]  ;;  %v3087_v59 = vld [vmem:[#allocation11_spill] sm:$0xff] }
 0x3e4   : > { %1939 = vpow2.f32 %v1165_v13  ;;  %v3088_v25 = vld [vmem:[#allocation10_spill] sm:$0xff] }
 0x3e5   : > { %1419 = vmatprep.subr.bf16.mxu0 %v1388_v48  ;;  %v1228_v30 = vpop.xlane.xlu0 %1227  ;;  %v1934_v10 = vpop.eup %1933 }
 0x3e6   : > { %1941 = vrcp.f32 %v1228_v30  ;;  %v1334_v40 = vmul.f32 %v1934_v10, %v2648_v19  ;;  %v1333_v1 = vmul.f32 %v1934_v10, %v2646_v49  ;;  %v3089_v10 = vld [vmem:[#allocation8_spill] sm:$0xff] }
 0x3e7   : > { %1943 = vpow2.f32 %v1167_v16 }
 0x3e8   : > { %v1936_v41 = vpop.eup %1935  ;;  %1945 = vpow2.f32 %v1173_v27 }
 0x3e9   : > { %v1336_v44 = vmul.f32 %v1936_v41, %v2656_v6  ;;  %1947 = vpow2.f32 %v1175_v0  ;;  %v1335_v29 = vmul.f32 %v1936_v41, %v2650_v60 }
 0x3ea   : > { %1420 = vmatpush1.bf16.xpose.msra.mxu0 %v1387_v42  ;;  %v1231_v37 = vpop.xlane.xlu1 %1230 }
 0x3eb   : > { %v1390_v21 = vpack.c.bf16 %v1336_v44, %v1334_v40  ;;  %1949 = vrcp.f32 %v1231_v37  ;;  %v1389_v6 = vpack.c.bf16 %v1335_v29, %v1333_v1 }
 0x3ed   : > { %1421 = vmatprep.subr.bf16.mxu0 %v1390_v21  ;;  %v1234_v58 = vpop.xlane.xlu0 %1233  ;;  %v1938_v12 = vpop.eup %1937 }
 0x3ee   : > { %1951 = vrcp.f32 %v1234_v58  ;;  %v2833_v19 = vpop.eup %1939  ;;  %v1338_v8 = vmul.f32 %v1938_v12, %v2664_v43 }
 0x3f0   : > { %v1942_v5 = vpop.eup %1941 }
 0x3f1   : > { %v2838_v60 = vpop.eup %1943  ;;  %v1340_v57 = vmul.f32 %v1942_v5, %v2672_v62  ;;  %v1339_v26 = vmul.f32 %v1942_v5, %v2666_v50  ;;  %v3085_v62 = vld [vmem:[#allocation21_spill] sm:$0xff] }
 0x3f2   : > { %1422 = vmatpush1.bf16.xpose.msra.mxu0 %v1389_v6  ;;  %v1237_v23 = vpop.xlane.xlu1 %1236  ;;  %v2843_v3 = vpop.eup %1945  ;;  %v1265_v20 = vadd.f32 %v2838_v60, %v2833_v19  ;;  %v1337_v61 = vmul.f32 %v1938_v12, %v3085_v62 }
 0x3f3   : > { %v1392_v49 = vpack.c.bf16 %v1340_v57, %v1338_v8  ;;  %1953 = vrcp.f32 %v1237_v23  ;;  %v2850_v35 = vpop.eup %1947 }
 0x3f4   : > { %349 = vperm.xlu0 %1779, %v299_v24   ;;  %v1391_v50 = vpack.c.bf16 %v1339_v26, %v1337_v61  ;;  %v1271_v13 = vadd.f32 %v2850_v35, %v2843_v3  ;;  %v300_v24 = vld [vmem:[%s3002_s2 + $0x50] sm:$0xff] }
 0x3f5   : > { %1423 = vmatprep.subr.bf16.mxu0 %v1392_v49  ;;  %v1240_v43 = vpop.xlane.xlu0 %1239  ;;  %v1950_v51 = vpop.eup %1949 }
 0x3f6   : > { %1955 = vrcp.f32 %v1240_v43  ;;  %1266 = vadd.xlane.f32.xlu1 %v1265_v20  ;;  %v1342_v28 = vmul.f32 %v1950_v51, %v3086_v4  ;;  %v1341_v27 = vmul.f32 %v1950_v51, %v3089_v10 }
 0x3f8   : > { %1553 = vperm.xlu0 %1779, %v1547_v54   ;;  %v1952_v17 = vpop.eup %1951  ;;  %v3092_v54 = vld [vmem:[#allocation12_spill] sm:$0xff] }
 0x3f9   : > { %v1344_v16 = vmul.f32 %v1952_v17, %v3087_v59  ;;  %v1343_v30 = vmul.f32 %v1952_v17, %v3088_v25  ;;  %v3093_v17 = vld [vmem:[#allocation16_spill] sm:$0xff]  ;;  %v3095_v59 = vld [vmem:[#allocation17_spill] sm:$0xff] }
 0x3fa   : > { %1424 = vmatpush1.bf16.xpose.msra.mxu0 %v1391_v50  ;;  %1272 = vadd.xlane.f32.xlu1 %v1271_v13  ;;  %v1243_v15 = vpop.xlane.xlu1 %1242  ;;  %v1548_v50 = vld [vmem:[%s3004_s4 + $0x8] sm:$0xff] }
 0x3fb   : > { %1957 = vrcp.f32 %v1243_v15  ;;  %v1394_v48 = vpack.c.bf16 %v1344_v16, %v1342_v28  ;;  %v1393_v42 = vpack.c.bf16 %v1343_v30, %v1341_v27  ;;  %v1550_v15 = vld [vmem:[%s3004_s4 + $0x18] sm:$0xff] }
 0x3fc   : > { %1563 = vperm.xlu0 %1779, %v1549_v36   ;;  %v1246_v11 = vpop.xlane.xlu0 %1245  ;;  %v3094_v36 = vld [vmem:[#allocation18_spill] sm:$0xff] }
 0x3fd   : > { %1425 = vmatprep.subr.bf16.mxu0 %v1394_v48  ;;  %1959 = vrcp.f32 %v1246_v11  ;;  %v1954_v0 = vpop.eup %1953  ;;  %v3096_v48 = vld [vmem:[#allocation15_spill] sm:$0xff] }
 0x3fe   : > { %v1346_v40 = vmul.f32 %v1954_v0, %v2696_v14  ;;  %v1345_v12 = vmul.f32 %v1954_v0, %v2694_v47  ;;  %v301_v47 = vld [vmem:[%s3002_s2 + $0x58] sm:$0xff] }
 0x400   : > { %v1956_v41 = vpop.eup %1955 }
 0x401   : > { %v1348_v44 = vmul.f32 %v1956_v41, %v2704_v33  ;;  %v1347_v29 = vmul.f32 %v1956_v41, %v2698_v46  ;;  %v3090_v33 = vld [vmem:[#allocation14_spill] sm:$0xff]  ;;  %v3091_v46 = vld [vmem:[#allocation13_spill] sm:$0xff] }
 0x402   : > { %1426 = vmatpush1.bf16.xpose.msra.mxu0 %v1393_v42  ;;  %v1249_v37 = vpop.xlane.xlu1 %1248 }
 0x403   : > { %1961 = vrcp.f32 %v1249_v37  ;;  %v1396_v21 = vpack.c.bf16 %v1348_v44, %v1346_v40  ;;  %v1395_v5 = vpack.c.bf16 %v1347_v29, %v1345_v12  ;;  %v2872_v49 = vpop.f32.mrb[20].mxu0  ;;  %v3097_v37 = vld [vmem:[#allocation19_spill] sm:$0xff] }
 0x404   : > { %v1252_v58 = vpop.xlane.xlu0 %1251  ;;  %v2877_v26 = vpop.f32.mrb[21].mxu0 }
 0x405   : > { %v1958_v1 = vpop.eup %1957  ;;  %1427 = vmatprep.subr.bf16.mxu0 %v1396_v21  ;;  %1963 = vrcp.f32 %v1252_v58 }
 0x406   : > { %v1350_v14 = vmul.f32 %v1958_v1, %v2712_v55  ;;  %v1349_v43 = vmul.f32 %v1958_v1, %v3092_v54  ;;  %v2880_v55 = vpop.f32.mrb[22].mxu0 }
 0x407   : > { %v1960_v6 = vpop.eup %1959  ;;  %v2882_v62 = vpop.f32.mrb[23].mxu0 }
 0x408   : > { %v1352_v8 = vmul.f32 %v1960_v6, %v3090_v33  ;;  %v1351_v23 = vmul.f32 %v1960_v6, %v3091_v46 }
 0x40a   : > { %1428 = vmatpush1.bf16.xpose.msra.mxu0 %v1395_v5  ;;  %v1398_v57 = vpack.c.bf16 %v1352_v8, %v1350_v14  ;;  %v1397_v51 = vpack.c.bf16 %v1351_v23, %v1349_v43  ;;  %v1255_v11 = vpop.xlane.xlu1 %1254 }
 0x40b   : > { %354 = vperm.xlu1 %1780, %v300_v24   ;;  %1965 = vrcp.f32 %v1255_v11 }
 0x40c   : > { %1429 = vmatprep.subr.bf16.mxu0 %v1398_v57 }
 0x40d   : > { %v1962_v20 = vpop.eup %1961 }
 0x40e   : > { %v1354_v13 = vmul.f32 %v1962_v20, %v3093_v17  ;;  %v1353_v25 = vmul.f32 %v1962_v20, %v3096_v48 }
 0x40f   : > { %v1964_v61 = vpop.eup %1963  ;;  %359 = vperm.xlu1 %1780, %v301_v47  }
 0x410   : > { %v1356_v4 = vmul.f32 %v1964_v61, %v3094_v36  ;;  %v1355_v16 = vmul.f32 %v1964_v61, %v3095_v59 }
 0x412   : > { %1430 = vmatpush1.bf16.xpose.msra.mxu0 %v1397_v51  ;;  %v1400_v28 = vpack.c.bf16 %v1356_v4, %v1354_v13  ;;  %v1399_v30 = vpack.c.bf16 %v1355_v16, %v1353_v25 }
 0x413   : > { %1558 = vperm.xlu1 %1780, %v1548_v50  }
 0x414   : > { %1431 = vmatprep.subr.bf16.mxu0 %v1400_v28 }
 0x415   : > { %v1966_v0 = vpop.eup %1965 }
 0x416   : > { %v1358_v40 = vmul.f32 %v1966_v0, %v2738_v34  ;;  %v1357_v21 = vmul.f32 %v1966_v0, %v3097_v37 }
 0x417   : > { %1568 = vperm.xlu1 %1780, %v1550_v15  }
 0x41a   : > { %1432 = vmatpush1.bf16.xpose.msra.mxu0 %v1399_v30 }
 0x44e   : > { %v1261_v27 = vpop.xlane.xlu1 %1260 }
 0x451   : > { %v1258_v10 = vpop.xlane.xlu0 %1257 }
 0x452   : > { %1967 = vrcp.f32 %v1258_v10  ;;  %v345_v57 = vpop.permute.xlu1 %344 }
 0x453   : > { %1969 = vrcp.f32 %v1261_v27  ;;  %v486_v23 = vadd.f32 %v2793_v22, %v345_v57  ;;  %v488_v47 = vadd.f32 %v2798_v53, %v345_v57 }
 0x45a   : > { %v1264_v42 = vpop.xlane.xlu0 %1263 }
 0x45b   : > { %1971 = vrcp.f32 %v1264_v42 }
 0x45c   : > { %v1968_v41 = vpop.eup %1967 }
 0x45d   : > { %v1360_v44 = vmul.f32 %v1968_v41, %v2764_v2  ;;  %v1359_v29 = vmul.f32 %v1968_v41, %v2762_v63  ;;  %v1970_v12 = vpop.eup %1969  ;;  %v1787_v41 = vld [vmem:[%s3003_s3] sm:$0xff]  }
 0x45e   : > { %v1362_v5 = vmul.f32 %v1970_v12, %v2756_v7  ;;  %v1361_v14 = vmul.f32 %v1970_v12, %v2754_v18  ;;  %v1982_v12 = vld [vmem:[%s2219_s14 + $0x8] sm:$0xff] }
 0x45f   : > { %v1402_v58 = vpack.c.bf16 %v1360_v44, %v1358_v40  ;;  %v1401_v1 = vpack.c.bf16 %v1359_v29, %v1357_v21  ;;  %v3098_v40 = vmov 0   ;;  %v1788_v44 = vld [vmem:[%s3003_s3 + $0x8] sm:$0xff]   ;;  %v1981_v21 = vld [vmem:[%s2219_s14] sm:$0xff] }
 0x461   : > { %1433 = vmatprep.subr.bf16.mxu0 %v1402_v58 }
 0x462   : > { %1434 = vmatpush1.bf16.xpose.msra.mxu0 %v1401_v1 }
 0x463   : > { %v1270_v8 = vpop.xlane.xlu0 %1269 }
 0x464   : > { %1973 = vrcp.f32 %v1270_v8 }
 0x465   : > { %v1972_v6 = vpop.eup %1971 }
 0x466   : > { %v1364_v24 = vmul.f32 %v1972_v6, %v2776_v32  ;;  %v1363_v34 = vmul.f32 %v1972_v6, %v2774_v45 }
 0x468   : > { %v1404_v33 = vpack.c.bf16 %v1364_v24, %v1362_v5  ;;  %v1403_v2 = vpack.c.bf16 %v1363_v34, %v1361_v14  ;;  %v1983_v14 = vld [vmem:[%s2219_s14 + $0x10] sm:$0xff] }
 0x46a   : > { %1435 = vmatprep.subr.bf16.mxu0 %v1404_v33 }
 0x46b   : > { %1436 = vmatpush1.bf16.xpose.msra.mxu0 %v1403_v2  ;;  %v1276_v63 = vpop.xlane.xlu0 %1275 }
 0x46e   : > { %v1974_v61 = vpop.eup %1973 }
 0x46f   : > { %v1368_v53 = vmul.f32 %v1974_v61, %v2791_v39 }
 0x473   : > { %v350_v46 = vpop.permute.xlu0 %349 }
 0x474   : > { %v490_v7 = vadd.f32 %v2828_v9, %v350_v46  ;;  %v492_v32 = vadd.f32 %v2830_v31, %v350_v46  ;;  %v1367_v31 = vmul.f32 %v1974_v61, %v2789_v38 }
 0x476   : > { %v1373_v20 = vpack.c.bf16 %v490_v7, %v486_v23  ;;  %v1374_v18 = vpack.c.bf16 %v492_v32, %v488_v47  ;;  %v1985_v7 = vld [vmem:[%s2219_s14 + $0x20] sm:$0xff] }
 0x477   : > { %v1554_v1 = vpop.permute.xlu0 %1553 }
 0x478   : > { %1441 = vmatprep.mubr.bf16.mxu0 %v1374_v18 }
 0x47b   : > { %v1564_v18 = vpop.permute.xlu0 %1563 }
 0x483   : > { %v1267_v45 = vpop.xlane.xlu1 %1266 }
 0x484   : > { %1975 = vrcp.f32 %v1267_v45  ;;  %v1986_v45 = vld [vmem:[%s2219_s14 + $0x28] sm:$0xff] }
 0x485   : > { %1977 = vrcp.f32 %v1276_v63  ;;  %v1984_v63 = vld [vmem:[%s2219_s14 + $0x18] sm:$0xff] }
 0x487   : > { %v1273_v54 = vpop.xlane.xlu1 %1272 }
 0x488   : > { %1979 = vrcp.f32 %v1273_v54 }
 0x48b   : > { %v355_v43 = vpop.permute.xlu1 %354 }
 0x48c   : > { %v496_v13 = vadd.f32 %v2872_v49, %v355_v43  ;;  %v498_v36 = vadd.f32 %v2877_v26, %v355_v43 }
 0x48e   : > { %v1976_v51 = vpop.eup %1975 }
 0x48f   : > { %v360_v50 = vpop.permute.xlu1 %359  ;;  %v1366_v22 = vmul.f32 %v1976_v51, %v2838_v60  ;;  %v1365_v9 = vmul.f32 %v1976_v51, %v2833_v19  ;;  %v1978_v17 = vpop.eup %1977  ;;  %v1987_v51 = vld [vmem:[%s2219_s14 + $0x30] sm:$0xff] }
 0x490   : > { %v500_v4 = vadd.f32 %v2880_v55, %v360_v50  ;;  %v502_v28 = vadd.f32 %v2882_v62, %v360_v50  ;;  %v1372_v19 = vmul.f32 %v1978_v17, %v2805_v56  ;;  %v1371_v26 = vmul.f32 %v1978_v17, %v2803_v52 }
 0x491   : > { %v1406_v59 = vpack.c.bf16 %v1368_v53, %v1366_v22  ;;  %v1405_v16 = vpack.c.bf16 %v1367_v31, %v1365_v9  ;;  %v1988_v31 = vld [vmem:[%s2219_s14 + $0x38] sm:$0xff]  ;;  %s2017_s14 = scalar_lea.vmem %s2946_s10, 1024 }
 0x492   : > { %v1980_v15 = vpop.eup %1979  ;;  %v1375_v48 = vpack.c.bf16 %v500_v4, %v496_v13  ;;  %v1376_v60 = vpack.c.bf16 %v502_v28, %v498_v36  ;;  %p2018_p6 = scmp.ne.s32.totalorder %s2946_s10, %s2017_s14  ;;  %p2025_p3 = scmp.lt.s32.totalorder %s2023_s17, %s2017_s14 }
 0x493   : > { %1437 = vmatprep.subr.bf16.mxu0 %v1406_v59  ;;  %v1370_v39 = vmul.f32 %v1980_v15, %v2850_v35  ;;  %v1369_v49 = vmul.f32 %v1980_v15, %v2843_v3  ;;  %v1559_v2 = vpop.permute.xlu1 %1558 }
 0x494   : > { %1438 = vmatpush1.bf16.xpose.msra.mxu0 %v1405_v16  ;;  %p2019_p10 = pnand %p2018_p6, %p3099_p9  ;;  %p2026_p4 = por %p2025_p3, %p2024_p2 }
 0x495   : > { %v1408_v38 = vpack.c.bf16 %v1372_v19, %v1370_v39  ;;  %v1407_v55 = vpack.c.bf16 %v1371_v26, %v1369_v49 }
 0x496   : > { %p2020_p12 = pneg %p2019_p10 }
 0x497   : > { %1439 = vmatprep.subr.bf16.mxu0 %v1408_v38  ;;  %v1569_v53 = vpop.permute.xlu1 %1568 }
 0x498   : > { %p2027_p7 = pnand %p2026_p4, %p2020_p12 }
 0x49c   : > { %1440 = vmatpush1.bf16.xpose.msra.mxu0 %v1407_v55 }
 0x4a3   : > { %1442 = vmatmul.mubr.bf16.vlgmr.msra.gmra.mrb[24].mxu0 %v1373_v20 }
 0x4a4   : > { %1451 = vmatprep.mubr.bf16.mxu0 %v1376_v60 }
 0x4ab   : > { %1452 = vmatmul.mubr.bf16.gmra.mrb[28].mxu0 %v1375_v48 }
 0x576   : > { %v1443_v62 = vpop.f32.mrb[24].mxu0 }
 0x577   : > { %v1445_v25 = vpop.f32.mrb[25].mxu0 }
 0x578   : > { %v1447_v30 = vpop.f32.mrb[26].mxu0 }
 0x579   : > { %v1466_v11 = vpack.c.bf16 %v1447_v30, %v1443_v62  ;;  %v1449_v10 = vpop.f32.mrb[27].mxu0 }
 0x57a   : > { %v1467_v35 = vpack.c.bf16 %v1449_v10, %v1445_v25 }
 0x57c   : > { %1486 = vmatprep.subr.bf16.mxu1 %v1467_v35 }
 0x57d   : > { %1487 = vmatpush1.bf16.msra.mxu1 %v1466_v11 }
 0x57e   : > { %v1453_v56 = vpop.f32.mrb[28].mxu0 }
 0x57f   : > { %v1455_v3 = vpop.f32.mrb[29].mxu0 }
 0x580   : > { %v1457_v27 = vpop.f32.mrb[30].mxu0 }
 0x581   : > { %v1468_v52 = vpack.c.bf16 %v1457_v27, %v1453_v56  ;;  %v1459_v0 = vpop.f32.mrb[31].mxu0 }
 0x582   : > { %v1469_v42 = vpack.c.bf16 %v1459_v0, %v1455_v3 }
 0x584   : > { %1488 = vmatprep.subr.bf16.mxu1 %v1469_v42 }
 0x585   : > { %1489 = vmatpush1.bf16.msra.mxu1 %v1468_v52 }
 0x588   : > { %1714 = vmatmul.mubr.msk.bf16.vlgmr.msra.gmra.mrb[64].mxu1 %vm392_vm0, %v1787_v41 }
 0x589   : > { %1528 = vmatprep.mubr.bf16.mxu1 %v3098_v40 }
 0x590   : > { %1715 = vmatmul.mubr.msk.bf16.gmra.mrb[68].mxu1 %vm392_vm0, %v1788_v44 }
 0x65b   : > { %v1520_v37 = vpop.f32.mrb[64].mxu1 }
 0x65c   : > { %v1539_v29 = vadd.f32 %v1981_v21, %v1520_v37  ;;  %v1522_v58 = vpop.f32.mrb[65].mxu1 }
 0x65d   : > { %v1540_v6 = vadd.f32 %v1982_v12, %v1522_v58  ;;  %v1524_v5 = vpop.f32.mrb[66].mxu1 }
 0x65e   : > { %v1571_v24 = vadd.f32 %v1554_v1, %v1539_v29  ;;  %v1541_v34 = vadd.f32 %v1983_v14, %v1524_v5  ;;  %v1526_v33 = vpop.f32.mrb[67].mxu1 }
 0x65f   : > { %v1572_v8 = vadd.f32 %v1554_v1, %v1540_v6  ;;  %v1542_v57 = vadd.f32 %v1984_v63, %v1526_v33 }
 0x660   : > { %1579 = vst [vmem:[%s2934_s29] sm:$0xff] %v1571_v24  ;;  %v1573_v46 = vadd.f32 %v1559_v2, %v1541_v34 }
 0x661   : > { %1580 = vst [vmem:[%s2934_s29 + $0x8] sm:$0xff] %v1572_v8  ;;  %v1574_v23 = vadd.f32 %v1559_v2, %v1542_v57 }
 0x662   : > { %1581 = vst [vmem:[%s2934_s29 + $0x10] sm:$0xff] %v1573_v46 }
 0x663   : > { %1582 = vst [vmem:[%s2934_s29 + $0x18] sm:$0xff] %v1574_v23  ;;  %v1530_v47 = vpop.f32.mrb[68].mxu1 }
 0x664   : > { %v1543_v32 = vadd.f32 %v1985_v7, %v1530_v47  ;;  %v1532_v20 = vpop.f32.mrb[69].mxu1 }
 0x665   : > { %v1544_v54 = vadd.f32 %v1986_v45, %v1532_v20  ;;  %v1534_v43 = vpop.f32.mrb[70].mxu1 }
 0x666   : > { %v1575_v61 = vadd.f32 %v1564_v18, %v1543_v32  ;;  %v1545_v50 = vadd.f32 %v1987_v51, %v1534_v43  ;;  %v1536_v22 = vpop.f32.mrb[71].mxu1 }
 0x667   : > { %v1576_v9 = vadd.f32 %v1564_v18, %v1544_v54  ;;  %v1546_v17 = vadd.f32 %v1988_v31, %v1536_v22 }
 0x668   : > { %1583 = vst [vmem:[%s2934_s29 + $0x20] sm:$0xff] %v1575_v61  ;;  %v1577_v13 = vadd.f32 %v1569_v53, %v1545_v50 }
 0x669   : > { %1584 = vst [vmem:[%s2934_s29 + $0x28] sm:$0xff] %v1576_v9  ;;  %v1578_v36 = vadd.f32 %v1569_v53, %v1546_v17 }
 0x66a   : > { %1585 = vst [vmem:[%s2934_s29 + $0x30] sm:$0xff] %v1577_v13 }
 0x66b   : > { %1586 = vst [vmem:[%s2934_s29 + $0x38] sm:$0xff] %v1578_v36 }
 0x66c   : > { %2030 = shalt.err (!%p2027_p7)
}
 0x66d   : > { %s2031_s18 = scalar_lea.hbm %s2953_s13, 1024  ;;  %s2035_s26 = scalar_lea.hbm %s3006_s6, 2048 }
 0x66e   : > { %p2032_p8 = scmp.ne.s32.totalorder %s2953_s13, %s2031_s18  ;;  %p2036_p1 = scmp.lt.u32.totalorder %s2953_s13, %s3006_s6 }
 0x66f   : > { %p2037_p0 = scmp.lt.u32.totalorder %s2035_s26, %s2031_s18  ;;  %p2039_p6 = scmp.lt.u32.totalorder %s2031_s18, %s2953_s13 }
 0x670   : > { %p2033_p11 = pnand %p2032_p8, %p3099_p9 }
 0x671   : > { %p2038_p5 = por %p2037_p0, %p2036_p1 }
 0x672   : > { %p2034_p13 = pneg %p2033_p11 }
 0x673   : > { %p2040_p10 = por %p2039_p6, %p2038_p5 }
 0x675   : > { %p2041_p12 = pnand %p2040_p10, %p2034_p13 }
 0x677   : > { %2044 = shalt.err (!%p2041_p12)
}
 0x678   : > { %s2090_s12 = smov 256   ;;  %s2091_s9 = smov 16  }
 0x679   : > { %1727 = dma.vmem_to_hbm [thread:$0]  (%p3099_p9), %s2946_s10, 1024, %s2953_s13, %s2959_s25, %s2090_s12, %s2090_s12, %s2091_s9  }
 0x67a PF: > { %p1739_p2 = scmp.ge.s32.totalorder %s2083_s24, 2  ;;  %s1616_s11 = sand.u32 1, %s2071_s21  }
 0x67b   : > { %p3100_p3 = scmp.ne.s32.totalorder %s3039_s8, 0  ;;  %s1617_s14 = scalar_lea.sflag [#allocation4], %s1616_s11 }
 0x67d   : > { %p1734_p4 = pnand %p1739_p2, %p3100_p3 }
 0x67f   : > { %2066 = dma.done.wait (!%p1734_p4), %s1617_s14, 1024  }
 0x680   : > { %2068 = vsyncadd (!%p1734_p4), %s1617_s14, 4294966272  ;;  %p17_p7 = scmp.ge.s32.totalorder %s2152_s27, 4   ;;  %s3101_s21 = smov %s2075_s22 }
 0x681   : > { %s3102_s22 = smov %s2079_s23  ;;  %s3103_s23 = smov %s2163_s30 }
 0x682   : > { %s3104_s24 = smov %s2152_s27  ;;  %19 = sbr.rel (!%p17_p7) target bundleno = 4 (0x4), region = 84 }
 0x689   :  { %1622 = vsyncpa [#allocation3], 1 }
 0x68a   :  { %1624 = vsyncpa [#allocation3 + $0x1], 1 }
 0x68b   :  { %1625 = vsyncpa [#allocation4], 1 }
 0x68c   :  { %1627 = vsyncpa [#allocation4 + $0x1], 1 }

</bundles_post_ra>
